<compile_context>
chip_gen: v5e
topology: v5e:2x2
jax: 0.10.0
libtpu: 0.0.40
codegen_flags: <defaults>
</compile_context>

<pallas_src>
import functools

import numpy as np
import jax
import jax.numpy as jnp
from jax.experimental import pallas as pl
from jax.experimental.pallas import tpu as pltpu

IMG_WIDTH = 16
IMG_HEIGHT = 16
NUM_CLASSES = 10          # len(IMAGENET_CLASSES)
C1 = 16                   # conv1 output channels
C2 = 29                   # conv2 effective output channels (filters[16:48] -> 29)
C2P = 32                  # conv2 channels padded for lane-group alignment
FC_HIDDEN = 128
S1 = 16                   # input spatial size
S2 = 8                    # after pool1
S3 = 4                    # after pool2


# ----------------------------------------------------------------------------
# Static filters (replicates ObjectDetectionCNN.get_static_filters, no cv2)
# ----------------------------------------------------------------------------
def _gaussian_kernel_3_sigma1():
    g = np.exp(-0.5 * np.array([-1.0, 0.0, 1.0]) ** 2)
    g = (g / g.sum()).astype(np.float64)
    return np.outer(g, g).astype(np.float32)


def get_static_filters():
    A = lambda lst: np.array(lst, dtype=np.float32).reshape(3, 3)
    filters = [
        A([0, 0, 0, 0, 1, 0, 0, 0, 0]),                       # Identity
        A([0, -1, 0, -1, 4, -1, 0, -1, 0]),                   # Edge Detection
        A([0, -1, 0, -1, 5, -1, 0, -1, 0]),                   # Sharpen
        (np.ones((3, 3), dtype=np.float32) / 9.0),            # Box Blur
        _gaussian_kernel_3_sigma1(),                          # Gaussian Blur
        A([1, 1, 1, -2, -2, -2, 1, 1, 1]),                    # Edge 0
        A([1, -2, 1, 1, -2, 1, 1, -2, 1]),                    # Edge 45
        A([-2, 1, 1, 1, -2, 1, 1, 1, -2]),                    # Edge 90
        A([1, 1, -2, -2, 1, 1, 1, -2, -2]),                   # Edge 135
        A([-1, -1, -1, 2, 2, 2, -1, -1, -1]),                 # Edge 180
        A([2, -1, -1, -1, 2, -1, -1, -1, 2]),                 # Edge 225
        A([-1, 2, -1, -1, 2, -1, -1, 2, -1]),                 # Edge 270
        A([1, -1, -1, -1, 1, 1, -1, -1, 1]),                  # Edge 315
        A([1, 1, 0, 1, 0, -1, 0, -1, -1]),                    # Corner 0
        A([1, 0, 1, 0, -1, 1, -1, -1, 0]),                    # Corner 45
        A([0, 1, 1, -1, 0, 1, -1, -1, 0]),                    # Corner 90
        A([1, 0, -1, 0, 1, 1, 0, -1, -1]),                    # Corner 135
        A([1, 1, 0, 1, 0, -1, 0, -1, -1]),                    # Corner 180
        A([1, 0, 1, 0, -1, 1, -1, -1, 0]),                    # Corner 225
        A([0, 1, 1, -1, 0, 1, -1, -1, 0]),                    # Corner 270
        A([1, 0, -1, 0, 1, 1, 0, -1, -1]),                    # Corner 315
        A([0, 1, 0, -1, 1, -1, 0, -1, 0]),                    # Curve 0
        A([1, 0, -1, 0, 1, 0, -1, 0, 1]),                     # Curve 45
        A([0, -1, 0, 1, 1, 1, 0, -1, 0]),                     # Curve 90
        A([-1, 0, 1, 0, 1, 0, 1, 0, -1]),                     # Curve 135
        A([0, -1, 0, -1, 1, -1, 0, 1, 0]),                    # Curve 180
        A([-1, 0, 1, 0, 1, 0, 1, 0, -1]),                     # Curve 225
        A([0, 1, 0, 1, 1, 1, 0, -1, 0]),                      # Curve 270
        A([1, 0, -1, 0, 1, 0, -1, 0, 1]),                     # Curve 315
        A([1, 1, 1, -2, -2, -2, 1, 1, 1]),                    # Line 0
        A([-2, 1, 1, 1, -2, 1, 1, 1, -2]),                    # Line 45
        A([-1, -1, -1, 2, 2, 2, -1, -1, -1]),                 # Line 90
        A([1, -2, 1, 1, -2, 1, 1, -2, 1]),                    # Line 135
        A([-1, -1, -1, -2, -2, -2, -1, -1, -1]),              # Line 180
        A([1, 1, -2, 1, -2, 1, -2, 1, 1]),                    # Line 225
        A([-1, 2, -1, -1, 2, -1, -1, 2, -1]),                 # Line 270
        A([1, -1, 1, -1, -2, -1, 1, -1, 1]),                  # Line 315
        A([-1, 0, 1, -2, 0, 2, -1, 0, 1]),                    # Sobel 0
        A([0, -1, -2, 1, 0, -1, 2, 1, 0]),                    # Sobel 45
        A([1, 2, 1, 0, 0, 0, -1, -2, -1]),                    # Sobel 90
        A([2, 1, 0, 1, 0, -1, 0, -1, -2]),                    # Sobel 135
        A([1, 0, -1, 2, 0, -2, 1, 0, -1]),                    # Sobel 180
        A([0, 1, 2, -1, 0, 1, -2, -1, 0]),                    # Sobel 225
        A([-1, -2, -1, 0, 0, 0, 1, 2, 1]),                    # Sobel 270
        A([-2, -1, 0, -1, 0, 1, 0, 1, 2]),                    # Sobel 315
    ]
    return filters  # 45 filters total


def build_conv_weights():
    """Full OIHW conv weights (used only by the pure-JAX reference)."""
    filters = get_static_filters()
    f1 = np.stack(filters[:C1], axis=0)[:, None, :, :]              # (16,1,3,3)
    conv1_w = np.repeat(f1, 3, axis=1).astype(np.float32)           # (16,3,3,3)
    f2 = np.stack(filters[C1:C1 + C2], axis=0)[:, None, :, :]       # (29,1,3,3)
    conv2_w = np.repeat(f2, 16, axis=1).astype(np.float32)          # (29,16,3,3)
    return conv1_w, conv2_w


# ----------------------------------------------------------------------------
# Static operand construction (all the selection / folded-weight matrices)
# ----------------------------------------------------------------------------
def build_static_operands(B, fc1_w, fc1_b, fc2_w, fc2_b):
    filters = get_static_filters()
    F1 = np.stack(filters[:C1], axis=0).astype(np.float32)          # (16,3,3)
    F2 = np.stack(filters[C1:C1 + C2], axis=0).astype(np.float32)   # (29,3,3)
    BP = ((B + 7) // 8) * 8                                         # padded M rows

    # conv1: row-gather + channel-sum (left) matrices, acting on x reshaped to
    # (B*3*16, 16) with row index b*48 + c*16 + h and lanes = w.
    r1s = np.zeros((3, B * S1, B * 3 * S1), np.float32)
    for dy in range(3):
        for b in range(B):
            for h in range(S1):
                hs = h + dy - 1
                if 0 <= hs < S1:
                    for c in range(3):
                        r1s[dy, b * S1 + h, b * 3 * S1 + c * S1 + hs] = 1.0
    # conv1: tap + output-channel placement (right) matrices -> lanes = w*16+o
    n1 = np.zeros((3, S1, S1 * C1), np.float32)
    for dy in range(3):
        for dx in range(3):
            for w in range(S1):
                ws = w + dx - 1
                if 0 <= ws < S1:
                    n1[dy, ws, w * C1:(w + 1) * C1] += F1[:, dy, dx]

    # pool1 gather matrices (rows from the left, lane groups from the right)
    rp1 = np.zeros((2, B * S2, B * S1), np.float32)
    for di in range(2):
        for b in range(B):
            for i in range(S2):
                rp1[di, b * S2 + i, b * S1 + 2 * i + di] = 1.0
    cp1 = np.zeros((2, S1 * C1, S2 * C1), np.float32)
    for dj in range(2):
        for j in range(S2):
            for o in range(C1):
                cp1[dj, (2 * j + dj) * C1 + o, j * C1 + o] = 1.0

    # channel sum feeding conv2 (conv2 weights are replicated over the 16 ch)
    sum1 = np.zeros((S2 * C1, S2), np.float32)
    for j in range(S2):
        sum1[j * C1:(j + 1) * C1, j] = 1.0

    # conv2 (input is the single-channel sum, spatial 8x8)
    r2 = np.zeros((3, B * S2, B * S2), np.float32)
    for dy in range(3):
        for b in range(B):
            for i in range(S2):
                isrc = i + dy - 1
                if 0 <= isrc < S2:
                    r2[dy, b * S2 + i, b * S2 + isrc] = 1.0
    n2 = np.zeros((3, S2, S2 * C2P), np.float32)
    for dy in range(3):
        for dx in range(3):
            for j in range(S2):
                js = j + dx - 1
                if 0 <= js < S2:
                    n2[dy, js, j * C2P:j * C2P + C2] += F2[:, dy, dx]

    # pool2 gather matrices
    rp2 = np.zeros((2, B * S3, B * S2), np.float32)
    for di in range(2):
        for b in range(B):
            for i in range(S3):
                rp2[di, b * S3 + i, b * S2 + 2 * i + di] = 1.0
    cp2 = np.zeros((2, S2 * C2P, S3 * C2P), np.float32)
    for dj in range(2):
        for j in range(S3):
            for o in range(C2P):
                cp2[dj, (2 * j + dj) * C2P + o, j * C2P + o] = 1.0

    # flatten (PyTorch NCHW order) folded into fc1:
    #   h = relu( sum_i (sel[i] @ p2) @ w1s[i] + b1 )
    sel = np.zeros((S3, BP, B * S3), np.float32)                    # rows >= B stay 0
    for i in range(S3):
        for b in range(B):
            sel[i, b, b * S3 + i] = 1.0
    w1s = np.zeros((S3, S3 * C2P, FC_HIDDEN), np.float32)
    for i in range(S3):
        for j in range(S3):
            for o in range(C2):
                w1s[i, j * C2P + o, :] = fc1_w[o * (S3 * S3) + i * S3 + j, :]

    # fc2 padded to a lane-dense (_, 128) output block
    w2p = np.zeros((FC_HIDDEN, 128), np.float32)
    w2p[:, :NUM_CLASSES] = fc2_w
    b2p = np.zeros((1, 128), np.float32)
    b2p[:, :NUM_CLASSES] = fc2_b
    b1 = fc1_b.reshape(1, FC_HIDDEN).astype(np.float32)

    ops = [r1s, n1, rp1, cp1, sum1, r2, n2, rp2, cp2, sel, w1s, b1, w2p, b2p]
    return [jnp.asarray(a) for a in ops], BP


# ----------------------------------------------------------------------------
# The fused Pallas kernel: whole forward pass, intermediates never leave VMEM
# ----------------------------------------------------------------------------
def fused_cnn_kernel(xr_ref, r1s_ref, n1_ref, rp1_ref, cp1_ref, sum1_ref,
                     r2_ref, n2_ref, rp2_ref, cp2_ref, sel_ref, w1s_ref,
                     b1_ref, w2_ref, b2_ref, o_ref):
    mm = functools.partial(jnp.dot, preferred_element_type=jnp.float32)
    xr = xr_ref[...]                                   # (B*48, 16)

    # conv1 + ReLU:  y1[(b,h), w*16 + o]
    y1 = mm(mm(r1s_ref[0], xr), n1_ref[0])
    for dy in (1, 2):
        y1 = y1 + mm(mm(r1s_ref[dy], xr), n1_ref[dy])
    y1 = jnp.maximum(y1, 0.0)                          # (B*16, 256)

    # 2x2 maxpool: elementwise max of 4 matmul-gathered corners
    cands = []
    for di in range(2):
        a = mm(rp1_ref[di], y1)                        # (B*8, 256)
        for dj in range(2):
            cands.append(mm(a, cp1_ref[dj]))           # (B*8, 128)
    p1 = jnp.maximum(jnp.maximum(cands[0], cands[1]),
                     jnp.maximum(cands[2], cands[3]))

    # conv2 + ReLU (acts on the channel-sum of p1, weights are replicated)
    x2 = mm(p1, sum1_ref[...])                         # (B*8, 8)
    y2 = mm(mm(r2_ref[0], x2), n2_ref[0])
    for dy in (1, 2):
        y2 = y2 + mm(mm(r2_ref[dy], x2), n2_ref[dy])
    y2 = jnp.maximum(y2, 0.0)                          # (B*8, 256)

    # 2x2 maxpool
    cands = []
    for di in range(2):
        a = mm(rp2_ref[di], y2)                        # (B*4, 256)
        for dj in range(2):
            cands.append(mm(a, cp2_ref[dj]))           # (B*4, 128)
    p2 = jnp.maximum(jnp.maximum(cands[0], cands[1]),
                     jnp.maximum(cands[2], cands[3]))

    # NCHW flatten folded into fc1 weights, then fc1 + ReLU + fc2
    acc = mm(mm(sel_ref[0], p2), w1s_ref[0])           # (8, 128)
    for i in (1, 2, 3):
        acc = acc + mm(mm(sel_ref[i], p2), w1s_ref[i])
    h = jnp.maximum(acc + b1_ref[...], 0.0)
    o_ref[...] = mm(h, w2_ref[...]) + b2_ref[...]      # lane-dense (8, 128)


def forward(x, operands, out_rows):
    B = x.shape[0]
    xr = x.reshape(B * 3 * IMG_HEIGHT, IMG_WIDTH)      # free NCHW row flatten
    out = pl.pallas_call(
        fused_cnn_kernel,
        out_shape=jax.ShapeDtypeStruct((out_rows, 128), jnp.float32),
        in_specs=[pl.BlockSpec(memory_space=pltpu.MemorySpace.VMEM)]
        * (1 + len(operands)),
        out_specs=pl.BlockSpec(memory_space=pltpu.MemorySpace.VMEM),
    )(xr, *operands)
    return out[:B, :NUM_CLASSES]


# ----------------------------------------------------------------------------
# Pure-JAX reference for the correctness check
# ----------------------------------------------------------------------------
def reference(x_nchw, conv1_w, conv2_w, fw1, fb1, fw2, fb2):
    dn = ("NCHW", "OIHW", "NCHW")
    y = jax.lax.conv_general_dilated(x_nchw, conv1_w, (1, 1), "SAME",
                                     dimension_numbers=dn)
    y = jnp.maximum(y, 0.0)
    y = jax.lax.reduce_window(y, -jnp.inf, jax.lax.max,
                              (1, 1, 2, 2), (1, 1, 2, 2), "VALID")
    y = jax.lax.conv_general_dilated(y, conv2_w, (1, 1), "SAME",
                                     dimension_numbers=dn)
    y = jnp.maximum(y, 0.0)
    y = jax.lax.reduce_window(y, -jnp.inf, jax.lax.max,
                              (1, 1, 2, 2), (1, 1, 2, 2), "VALID")
    flat = y.reshape(y.shape[0], -1)
    h = jnp.maximum(flat @ fw1 + fb1, 0.0)
    return h @ fw2 + fb2


# ----------------------------------------------------------------------------
if __name__ == "__main__":
    B = 2
    conv1_w, conv2_w = build_conv_weights()
    flattened_size = C2 * (IMG_HEIGHT // 4) * (IMG_WIDTH // 4)   # 29*4*4 = 464

    key = jax.random.PRNGKey(0)
    kx, k1, k2, k3, k4 = jax.random.split(key, 5)
    x = jax.random.normal(kx, (B, 3, IMG_HEIGHT, IMG_WIDTH), dtype=jnp.float32)

    bound1 = 1.0 / np.sqrt(flattened_size)
    fc1_w = jax.random.uniform(k1, (flattened_size, FC_HIDDEN), jnp.float32,
                               -bound1, bound1)
    fc1_b = jax.random.uniform(k2, (1, FC_HIDDEN), jnp.float32, -bound1, bound1)
    bound2 = 1.0 / np.sqrt(FC_HIDDEN)
    fc2_w = jax.random.uniform(k3, (FC_HIDDEN, NUM_CLASSES), jnp.float32,
                               -bound2, bound2)
    fc2_b = jax.random.uniform(k4, (1, NUM_CLASSES), jnp.float32, -bound2, bound2)

    operands, BP = build_static_operands(
        B, np.asarray(fc1_w), np.asarray(fc1_b),
        np.asarray(fc2_w), np.asarray(fc2_b))

    fwd = jax.jit(forward, static_argnames=("out_rows",))
    out = jax.block_until_ready(fwd(x, operands, out_rows=BP))

    ref = jax.block_until_ready(
        reference(x, jnp.asarray(conv1_w), jnp.asarray(conv2_w),
                  fc1_w, fc1_b, fc2_w, fc2_b))
    np.testing.assert_allclose(np.asarray(out), np.asarray(ref),
                               rtol=2e-2, atol=2e-2)

    assert out.shape == (B, NUM_CLASSES)
    print("KERNEL_OK")
</pallas_src>

<mosaic_0001>
module attributes {stable_mosaic.version = 11 : i64} {
  func.func @fused_cnn_kernel(%arg0: memref<96x16xf32, #tpu.memory_space<vmem>>, %arg1: memref<3x32x96xf32, #tpu.memory_space<vmem>>, %arg2: memref<3x16x256xf32, #tpu.memory_space<vmem>>, %arg3: memref<2x16x32xf32, #tpu.memory_space<vmem>>, %arg4: memref<2x256x128xf32, #tpu.memory_space<vmem>>, %arg5: memref<128x8xf32, #tpu.memory_space<vmem>>, %arg6: memref<3x16x16xf32, #tpu.memory_space<vmem>>, %arg7: memref<3x8x256xf32, #tpu.memory_space<vmem>>, %arg8: memref<2x8x16xf32, #tpu.memory_space<vmem>>, %arg9: memref<2x256x128xf32, #tpu.memory_space<vmem>>, %arg10: memref<4x8x8xf32, #tpu.memory_space<vmem>>, %arg11: memref<4x128x128xf32, #tpu.memory_space<vmem>>, %arg12: memref<1x128xf32, #tpu.memory_space<vmem>>, %arg13: memref<128x128xf32, #tpu.memory_space<vmem>>, %arg14: memref<1x128xf32, #tpu.memory_space<vmem>>, %arg15: memref<8x128xf32, #tpu.memory_space<vmem>>) attributes {dimension_semantics = [], scalar_prefetch = 0 : i64, scratch_operands = 0 : i64, tpu.core_type = #tpu.core_type<tc>} {
    %c0 = arith.constant 0 : index
    %c0_0 = arith.constant 0 : index
    %0 = vector.load %arg0[%c0, %c0_0] : memref<96x16xf32, #tpu.memory_space<vmem>>, vector<96x16xf32>
    %c0_1 = arith.constant 0 : index
    %c0_2 = arith.constant 0 : index
    %c0_3 = arith.constant 0 : index
    %1 = vector.load %arg1[%c0_1, %c0_2, %c0_3] : memref<3x32x96xf32, #tpu.memory_space<vmem>>, vector<1x32x96xf32>
    %2 = vector.shape_cast %1 : vector<1x32x96xf32> to vector<32x96xf32>
    %cst = arith.constant dense<0.000000e+00> : vector<32x16xf32>
    %3 = tpu.matmul %2, %0, %cst {dimension_numbers = #tpu.dot_dimension_numbers<[1], [0], [0], [1], [0, 0, 1, 1], [], []>} : vector<32x96xf32>, vector<96x16xf32>, vector<32x16xf32> -> vector<32x16xf32>
    %c0_4 = arith.constant 0 : index
    %c0_5 = arith.constant 0 : index
    %c0_6 = arith.constant 0 : index
    %4 = vector.load %arg2[%c0_4, %c0_5, %c0_6] : memref<3x16x256xf32, #tpu.memory_space<vmem>>, vector<1x16x256xf32>
    %5 = vector.shape_cast %4 : vector<1x16x256xf32> to vector<16x256xf32>
    %cst_7 = arith.constant dense<0.000000e+00> : vector<32x256xf32>
    %6 = tpu.matmul %3, %5, %cst_7 {dimension_numbers = #tpu.dot_dimension_numbers<[1], [0], [0], [1], [0, 0, 1, 1], [], []>} : vector<32x16xf32>, vector<16x256xf32>, vector<32x256xf32> -> vector<32x256xf32>
    %c1 = arith.constant 1 : index
    %c0_8 = arith.constant 0 : index
    %c0_9 = arith.constant 0 : index
    %7 = vector.load %arg1[%c1, %c0_8, %c0_9] : memref<3x32x96xf32, #tpu.memory_space<vmem>>, vector<1x32x96xf32>
    %8 = vector.shape_cast %7 : vector<1x32x96xf32> to vector<32x96xf32>
    %cst_10 = arith.constant dense<0.000000e+00> : vector<32x16xf32>
    %9 = tpu.matmul %8, %0, %cst_10 {dimension_numbers = #tpu.dot_dimension_numbers<[1], [0], [0], [1], [0, 0, 1, 1], [], []>} : vector<32x96xf32>, vector<96x16xf32>, vector<32x16xf32> -> vector<32x16xf32>
    %c1_11 = arith.constant 1 : index
    %c0_12 = arith.constant 0 : index
    %c0_13 = arith.constant 0 : index
    %10 = vector.load %arg2[%c1_11, %c0_12, %c0_13] : memref<3x16x256xf32, #tpu.memory_space<vmem>>, vector<1x16x256xf32>
    %11 = vector.shape_cast %10 : vector<1x16x256xf32> to vector<16x256xf32>
    %cst_14 = arith.constant dense<0.000000e+00> : vector<32x256xf32>
    %12 = tpu.matmul %9, %11, %cst_14 {dimension_numbers = #tpu.dot_dimension_numbers<[1], [0], [0], [1], [0, 0, 1, 1], [], []>} : vector<32x16xf32>, vector<16x256xf32>, vector<32x256xf32> -> vector<32x256xf32>
    %13 = arith.addf %6, %12 : vector<32x256xf32>
    %c2 = arith.constant 2 : index
    %c0_15 = arith.constant 0 : index
    %c0_16 = arith.constant 0 : index
    %14 = vector.load %arg1[%c2, %c0_15, %c0_16] : memref<3x32x96xf32, #tpu.memory_space<vmem>>, vector<1x32x96xf32>
    %15 = vector.shape_cast %14 : vector<1x32x96xf32> to vector<32x96xf32>
    %cst_17 = arith.constant dense<0.000000e+00> : vector<32x16xf32>
    %16 = tpu.matmul %15, %0, %cst_17 {dimension_numbers = #tpu.dot_dimension_numbers<[1], [0], [0], [1], [0, 0, 1, 1], [], []>} : vector<32x96xf32>, vector<96x16xf32>, vector<32x16xf32> -> vector<32x16xf32>
    %c2_18 = arith.constant 2 : index
    %c0_19 = arith.constant 0 : index
    %c0_20 = arith.constant 0 : index
    %17 = vector.load %arg2[%c2_18, %c0_19, %c0_20] : memref<3x16x256xf32, #tpu.memory_space<vmem>>, vector<1x16x256xf32>
    %18 = vector.shape_cast %17 : vector<1x16x256xf32> to vector<16x256xf32>
    %cst_21 = arith.constant dense<0.000000e+00> : vector<32x256xf32>
    %19 = tpu.matmul %16, %18, %cst_21 {dimension_numbers = #tpu.dot_dimension_numbers<[1], [0], [0], [1], [0, 0, 1, 1], [], []>} : vector<32x16xf32>, vector<16x256xf32>, vector<32x256xf32> -> vector<32x256xf32>
    %20 = arith.addf %13, %19 : vector<32x256xf32>
    %cst_22 = arith.constant 0.000000e+00 : f32
    %21 = vector.broadcast %cst_22 : f32 to vector<32x256xf32>
    %22 = arith.maximumf %20, %21 : vector<32x256xf32>
    %c0_23 = arith.constant 0 : index
    %c0_24 = arith.constant 0 : index
    %c0_25 = arith.constant 0 : index
    %23 = vector.load %arg3[%c0_23, %c0_24, %c0_25] : memref<2x16x32xf32, #tpu.memory_space<vmem>>, vector<1x16x32xf32>
    %24 = vector.shape_cast %23 : vector<1x16x32xf32> to vector<16x32xf32>
    %cst_26 = arith.constant dense<0.000000e+00> : vector<16x256xf32>
    %25 = tpu.matmul %24, %22, %cst_26 {dimension_numbers = #tpu.dot_dimension_numbers<[1], [0], [0], [1], [0, 0, 1, 1], [], []>} : vector<16x32xf32>, vector<32x256xf32>, vector<16x256xf32> -> vector<16x256xf32>
    %c0_27 = arith.constant 0 : index
    %c0_28 = arith.constant 0 : index
    %c0_29 = arith.constant 0 : index
    %26 = vector.load %arg4[%c0_27, %c0_28, %c0_29] : memref<2x256x128xf32, #tpu.memory_space<vmem>>, vector<1x256x128xf32>
    %27 = vector.shape_cast %26 : vector<1x256x128xf32> to vector<256x128xf32>
    %cst_30 = arith.constant dense<0.000000e+00> : vector<16x128xf32>
    %28 = tpu.matmul %25, %27, %cst_30 {dimension_numbers = #tpu.dot_dimension_numbers<[1], [0], [0], [1], [0, 0, 1, 1], [], []>} : vector<16x256xf32>, vector<256x128xf32>, vector<16x128xf32> -> vector<16x128xf32>
    %c1_31 = arith.constant 1 : index
    %c0_32 = arith.constant 0 : index
    %c0_33 = arith.constant 0 : index
    %29 = vector.load %arg4[%c1_31, %c0_32, %c0_33] : memref<2x256x128xf32, #tpu.memory_space<vmem>>, vector<1x256x128xf32>
    %30 = vector.shape_cast %29 : vector<1x256x128xf32> to vector<256x128xf32>
    %cst_34 = arith.constant dense<0.000000e+00> : vector<16x128xf32>
    %31 = tpu.matmul %25, %30, %cst_34 {dimension_numbers = #tpu.dot_dimension_numbers<[1], [0], [0], [1], [0, 0, 1, 1], [], []>} : vector<16x256xf32>, vector<256x128xf32>, vector<16x128xf32> -> vector<16x128xf32>
    %c1_35 = arith.constant 1 : index
    %c0_36 = arith.constant 0 : index
    %c0_37 = arith.constant 0 : index
    %32 = vector.load %arg3[%c1_35, %c0_36, %c0_37] : memref<2x16x32xf32, #tpu.memory_space<vmem>>, vector<1x16x32xf32>
    %33 = vector.shape_cast %32 : vector<1x16x32xf32> to vector<16x32xf32>
    %cst_38 = arith.constant dense<0.000000e+00> : vector<16x256xf32>
    %34 = tpu.matmul %33, %22, %cst_38 {dimension_numbers = #tpu.dot_dimension_numbers<[1], [0], [0], [1], [0, 0, 1, 1], [], []>} : vector<16x32xf32>, vector<32x256xf32>, vector<16x256xf32> -> vector<16x256xf32>
    %c0_39 = arith.constant 0 : index
    %c0_40 = arith.constant 0 : index
    %c0_41 = arith.constant 0 : index
    %35 = vector.load %arg4[%c0_39, %c0_40, %c0_41] : memref<2x256x128xf32, #tpu.memory_space<vmem>>, vector<1x256x128xf32>
    %36 = vector.shape_cast %35 : vector<1x256x128xf32> to vector<256x128xf32>
    %cst_42 = arith.constant dense<0.000000e+00> : vector<16x128xf32>
    %37 = tpu.matmul %34, %36, %cst_42 {dimension_numbers = #tpu.dot_dimension_numbers<[1], [0], [0], [1], [0, 0, 1, 1], [], []>} : vector<16x256xf32>, vector<256x128xf32>, vector<16x128xf32> -> vector<16x128xf32>
    %c1_43 = arith.constant 1 : index
    %c0_44 = arith.constant 0 : index
    %c0_45 = arith.constant 0 : index
    %38 = vector.load %arg4[%c1_43, %c0_44, %c0_45] : memref<2x256x128xf32, #tpu.memory_space<vmem>>, vector<1x256x128xf32>
    %39 = vector.shape_cast %38 : vector<1x256x128xf32> to vector<256x128xf32>
    %cst_46 = arith.constant dense<0.000000e+00> : vector<16x128xf32>
    %40 = tpu.matmul %34, %39, %cst_46 {dimension_numbers = #tpu.dot_dimension_numbers<[1], [0], [0], [1], [0, 0, 1, 1], [], []>} : vector<16x256xf32>, vector<256x128xf32>, vector<16x128xf32> -> vector<16x128xf32>
    %41 = arith.maximumf %28, %31 : vector<16x128xf32>
    %42 = arith.maximumf %37, %40 : vector<16x128xf32>
    %43 = arith.maximumf %41, %42 : vector<16x128xf32>
    %c0_47 = arith.constant 0 : index
    %c0_48 = arith.constant 0 : index
    %44 = vector.load %arg5[%c0_47, %c0_48] : memref<128x8xf32, #tpu.memory_space<vmem>>, vector<128x8xf32>
    %cst_49 = arith.constant dense<0.000000e+00> : vector<16x8xf32>
    %45 = tpu.matmul %43, %44, %cst_49 {dimension_numbers = #tpu.dot_dimension_numbers<[1], [0], [0], [1], [0, 0, 1, 1], [], []>} : vector<16x128xf32>, vector<128x8xf32>, vector<16x8xf32> -> vector<16x8xf32>
    %c0_50 = arith.constant 0 : index
    %c0_51 = arith.constant 0 : index
    %c0_52 = arith.constant 0 : index
    %46 = vector.load %arg6[%c0_50, %c0_51, %c0_52] : memref<3x16x16xf32, #tpu.memory_space<vmem>>, vector<1x16x16xf32>
    %47 = vector.shape_cast %46 : vector<1x16x16xf32> to vector<16x16xf32>
    %cst_53 = arith.constant dense<0.000000e+00> : vector<16x8xf32>
    %48 = tpu.matmul %47, %45, %cst_53 {dimension_numbers = #tpu.dot_dimension_numbers<[1], [0], [0], [1], [0, 0, 1, 1], [], []>} : vector<16x16xf32>, vector<16x8xf32>, vector<16x8xf32> -> vector<16x8xf32>
    %c0_54 = arith.constant 0 : index
    %c0_55 = arith.constant 0 : index
    %c0_56 = arith.constant 0 : index
    %49 = vector.load %arg7[%c0_54, %c0_55, %c0_56] : memref<3x8x256xf32, #tpu.memory_space<vmem>>, vector<1x8x256xf32>
    %50 = vector.shape_cast %49 : vector<1x8x256xf32> to vector<8x256xf32>
    %cst_57 = arith.constant dense<0.000000e+00> : vector<16x256xf32>
    %51 = tpu.matmul %48, %50, %cst_57 {dimension_numbers = #tpu.dot_dimension_numbers<[1], [0], [0], [1], [0, 0, 1, 1], [], []>} : vector<16x8xf32>, vector<8x256xf32>, vector<16x256xf32> -> vector<16x256xf32>
    %c1_58 = arith.constant 1 : index
    %c0_59 = arith.constant 0 : index
    %c0_60 = arith.constant 0 : index
    %52 = vector.load %arg6[%c1_58, %c0_59, %c0_60] : memref<3x16x16xf32, #tpu.memory_space<vmem>>, vector<1x16x16xf32>
    %53 = vector.shape_cast %52 : vector<1x16x16xf32> to vector<16x16xf32>
    %cst_61 = arith.constant dense<0.000000e+00> : vector<16x8xf32>
    %54 = tpu.matmul %53, %45, %cst_61 {dimension_numbers = #tpu.dot_dimension_numbers<[1], [0], [0], [1], [0, 0, 1, 1], [], []>} : vector<16x16xf32>, vector<16x8xf32>, vector<16x8xf32> -> vector<16x8xf32>
    %c1_62 = arith.constant 1 : index
    %c0_63 = arith.constant 0 : index
    %c0_64 = arith.constant 0 : index
    %55 = vector.load %arg7[%c1_62, %c0_63, %c0_64] : memref<3x8x256xf32, #tpu.memory_space<vmem>>, vector<1x8x256xf32>
    %56 = vector.shape_cast %55 : vector<1x8x256xf32> to vector<8x256xf32>
    %cst_65 = arith.constant dense<0.000000e+00> : vector<16x256xf32>
    %57 = tpu.matmul %54, %56, %cst_65 {dimension_numbers = #tpu.dot_dimension_numbers<[1], [0], [0], [1], [0, 0, 1, 1], [], []>} : vector<16x8xf32>, vector<8x256xf32>, vector<16x256xf32> -> vector<16x256xf32>
    %58 = arith.addf %51, %57 : vector<16x256xf32>
    %c2_66 = arith.constant 2 : index
    %c0_67 = arith.constant 0 : index
    %c0_68 = arith.constant 0 : index
    %59 = vector.load %arg6[%c2_66, %c0_67, %c0_68] : memref<3x16x16xf32, #tpu.memory_space<vmem>>, vector<1x16x16xf32>
    %60 = vector.shape_cast %59 : vector<1x16x16xf32> to vector<16x16xf32>
    %cst_69 = arith.constant dense<0.000000e+00> : vector<16x8xf32>
    %61 = tpu.matmul %60, %45, %cst_69 {dimension_numbers = #tpu.dot_dimension_numbers<[1], [0], [0], [1], [0, 0, 1, 1], [], []>} : vector<16x16xf32>, vector<16x8xf32>, vector<16x8xf32> -> vector<16x8xf32>
    %c2_70 = arith.constant 2 : index
    %c0_71 = arith.constant 0 : index
    %c0_72 = arith.constant 0 : index
    %62 = vector.load %arg7[%c2_70, %c0_71, %c0_72] : memref<3x8x256xf32, #tpu.memory_space<vmem>>, vector<1x8x256xf32>
    %63 = vector.shape_cast %62 : vector<1x8x256xf32> to vector<8x256xf32>
    %cst_73 = arith.constant dense<0.000000e+00> : vector<16x256xf32>
    %64 = tpu.matmul %61, %63, %cst_73 {dimension_numbers = #tpu.dot_dimension_numbers<[1], [0], [0], [1], [0, 0, 1, 1], [], []>} : vector<16x8xf32>, vector<8x256xf32>, vector<16x256xf32> -> vector<16x256xf32>
    %65 = arith.addf %58, %64 : vector<16x256xf32>
    %cst_74 = arith.constant 0.000000e+00 : f32
    %66 = vector.broadcast %cst_74 : f32 to vector<16x256xf32>
    %67 = arith.maximumf %65, %66 : vector<16x256xf32>
    %c0_75 = arith.constant 0 : index
    %c0_76 = arith.constant 0 : index
    %c0_77 = arith.constant 0 : index
    %68 = vector.load %arg8[%c0_75, %c0_76, %c0_77] : memref<2x8x16xf32, #tpu.memory_space<vmem>>, vector<1x8x16xf32>
    %69 = vector.shape_cast %68 : vector<1x8x16xf32> to vector<8x16xf32>
    %cst_78 = arith.constant dense<0.000000e+00> : vector<8x256xf32>
    %70 = tpu.matmul %69, %67, %cst_78 {dimension_numbers = #tpu.dot_dimension_numbers<[1], [0], [0], [1], [0, 0, 1, 1], [], []>} : vector<8x16xf32>, vector<16x256xf32>, vector<8x256xf32> -> vector<8x256xf32>
    %c0_79 = arith.constant 0 : index
    %c0_80 = arith.constant 0 : index
    %c0_81 = arith.constant 0 : index
    %71 = vector.load %arg9[%c0_79, %c0_80, %c0_81] : memref<2x256x128xf32, #tpu.memory_space<vmem>>, vector<1x256x128xf32>
    %72 = vector.shape_cast %71 : vector<1x256x128xf32> to vector<256x128xf32>
    %cst_82 = arith.constant dense<0.000000e+00> : vector<8x128xf32>
    %73 = tpu.matmul %70, %72, %cst_82 {dimension_numbers = #tpu.dot_dimension_numbers<[1], [0], [0], [1], [0, 0, 1, 1], [], []>} : vector<8x256xf32>, vector<256x128xf32>, vector<8x128xf32> -> vector<8x128xf32>
    %c1_83 = arith.constant 1 : index
    %c0_84 = arith.constant 0 : index
    %c0_85 = arith.constant 0 : index
    %74 = vector.load %arg9[%c1_83, %c0_84, %c0_85] : memref<2x256x128xf32, #tpu.memory_space<vmem>>, vector<1x256x128xf32>
    %75 = vector.shape_cast %74 : vector<1x256x128xf32> to vector<256x128xf32>
    %cst_86 = arith.constant dense<0.000000e+00> : vector<8x128xf32>
    %76 = tpu.matmul %70, %75, %cst_86 {dimension_numbers = #tpu.dot_dimension_numbers<[1], [0], [0], [1], [0, 0, 1, 1], [], []>} : vector<8x256xf32>, vector<256x128xf32>, vector<8x128xf32> -> vector<8x128xf32>
    %c1_87 = arith.constant 1 : index
    %c0_88 = arith.constant 0 : index
    %c0_89 = arith.constant 0 : index
    %77 = vector.load %arg8[%c1_87, %c0_88, %c0_89] : memref<2x8x16xf32, #tpu.memory_space<vmem>>, vector<1x8x16xf32>
    %78 = vector.shape_cast %77 : vector<1x8x16xf32> to vector<8x16xf32>
    %cst_90 = arith.constant dense<0.000000e+00> : vector<8x256xf32>
    %79 = tpu.matmul %78, %67, %cst_90 {dimension_numbers = #tpu.dot_dimension_numbers<[1], [0], [0], [1], [0, 0, 1, 1], [], []>} : vector<8x16xf32>, vector<16x256xf32>, vector<8x256xf32> -> vector<8x256xf32>
    %c0_91 = arith.constant 0 : index
    %c0_92 = arith.constant 0 : index
    %c0_93 = arith.constant 0 : index
    %80 = vector.load %arg9[%c0_91, %c0_92, %c0_93] : memref<2x256x128xf32, #tpu.memory_space<vmem>>, vector<1x256x128xf32>
    %81 = vector.shape_cast %80 : vector<1x256x128xf32> to vector<256x128xf32>
    %cst_94 = arith.constant dense<0.000000e+00> : vector<8x128xf32>
    %82 = tpu.matmul %79, %81, %cst_94 {dimension_numbers = #tpu.dot_dimension_numbers<[1], [0], [0], [1], [0, 0, 1, 1], [], []>} : vector<8x256xf32>, vector<256x128xf32>, vector<8x128xf32> -> vector<8x128xf32>
    %c1_95 = arith.constant 1 : index
    %c0_96 = arith.constant 0 : index
    %c0_97 = arith.constant 0 : index
    %83 = vector.load %arg9[%c1_95, %c0_96, %c0_97] : memref<2x256x128xf32, #tpu.memory_space<vmem>>, vector<1x256x128xf32>
    %84 = vector.shape_cast %83 : vector<1x256x128xf32> to vector<256x128xf32>
    %cst_98 = arith.constant dense<0.000000e+00> : vector<8x128xf32>
    %85 = tpu.matmul %79, %84, %cst_98 {dimension_numbers = #tpu.dot_dimension_numbers<[1], [0], [0], [1], [0, 0, 1, 1], [], []>} : vector<8x256xf32>, vector<256x128xf32>, vector<8x128xf32> -> vector<8x128xf32>
    %86 = arith.maximumf %73, %76 : vector<8x128xf32>
    %87 = arith.maximumf %82, %85 : vector<8x128xf32>
    %88 = arith.maximumf %86, %87 : vector<8x128xf32>
    %c0_99 = arith.constant 0 : index
    %c0_100 = arith.constant 0 : index
    %c0_101 = arith.constant 0 : index
    %89 = vector.load %arg10[%c0_99, %c0_100, %c0_101] : memref<4x8x8xf32, #tpu.memory_space<vmem>>, vector<1x8x8xf32>
    %90 = vector.shape_cast %89 : vector<1x8x8xf32> to vector<8x8xf32>
    %cst_102 = arith.constant dense<0.000000e+00> : vector<8x128xf32>
    %91 = tpu.matmul %90, %88, %cst_102 {dimension_numbers = #tpu.dot_dimension_numbers<[1], [0], [0], [1], [0, 0, 1, 1], [], []>} : vector<8x8xf32>, vector<8x128xf32>, vector<8x128xf32> -> vector<8x128xf32>
    %c0_103 = arith.constant 0 : index
    %c0_104 = arith.constant 0 : index
    %c0_105 = arith.constant 0 : index
    %92 = vector.load %arg11[%c0_103, %c0_104, %c0_105] : memref<4x128x128xf32, #tpu.memory_space<vmem>>, vector<1x128x128xf32>
    %93 = vector.shape_cast %92 : vector<1x128x128xf32> to vector<128x128xf32>
    %cst_106 = arith.constant dense<0.000000e+00> : vector<8x128xf32>
    %94 = tpu.matmul %91, %93, %cst_106 {dimension_numbers = #tpu.dot_dimension_numbers<[1], [0], [0], [1], [0, 0, 1, 1], [], []>} : vector<8x128xf32>, vector<128x128xf32>, vector<8x128xf32> -> vector<8x128xf32>
    %c1_107 = arith.constant 1 : index
    %c0_108 = arith.constant 0 : index
    %c0_109 = arith.constant 0 : index
    %95 = vector.load %arg10[%c1_107, %c0_108, %c0_109] : memref<4x8x8xf32, #tpu.memory_space<vmem>>, vector<1x8x8xf32>
    %96 = vector.shape_cast %95 : vector<1x8x8xf32> to vector<8x8xf32>
    %cst_110 = arith.constant dense<0.000000e+00> : vector<8x128xf32>
    %97 = tpu.matmul %96, %88, %cst_110 {dimension_numbers = #tpu.dot_dimension_numbers<[1], [0], [0], [1], [0, 0, 1, 1], [], []>} : vector<8x8xf32>, vector<8x128xf32>, vector<8x128xf32> -> vector<8x128xf32>
    %c1_111 = arith.constant 1 : index
    %c0_112 = arith.constant 0 : index
    %c0_113 = arith.constant 0 : index
    %98 = vector.load %arg11[%c1_111, %c0_112, %c0_113] : memref<4x128x128xf32, #tpu.memory_space<vmem>>, vector<1x128x128xf32>
    %99 = vector.shape_cast %98 : vector<1x128x128xf32> to vector<128x128xf32>
    %cst_114 = arith.constant dense<0.000000e+00> : vector<8x128xf32>
    %100 = tpu.matmul %97, %99, %cst_114 {dimension_numbers = #tpu.dot_dimension_numbers<[1], [0], [0], [1], [0, 0, 1, 1], [], []>} : vector<8x128xf32>, vector<128x128xf32>, vector<8x128xf32> -> vector<8x128xf32>
    %101 = arith.addf %94, %100 : vector<8x128xf32>
    %c2_115 = arith.constant 2 : index
    %c0_116 = arith.constant 0 : index
    %c0_117 = arith.constant 0 : index
    %102 = vector.load %arg10[%c2_115, %c0_116, %c0_117] : memref<4x8x8xf32, #tpu.memory_space<vmem>>, vector<1x8x8xf32>
    %103 = vector.shape_cast %102 : vector<1x8x8xf32> to vector<8x8xf32>
    %cst_118 = arith.constant dense<0.000000e+00> : vector<8x128xf32>
    %104 = tpu.matmul %103, %88, %cst_118 {dimension_numbers = #tpu.dot_dimension_numbers<[1], [0], [0], [1], [0, 0, 1, 1], [], []>} : vector<8x8xf32>, vector<8x128xf32>, vector<8x128xf32> -> vector<8x128xf32>
    %c2_119 = arith.constant 2 : index
    %c0_120 = arith.constant 0 : index
    %c0_121 = arith.constant 0 : index
    %105 = vector.load %arg11[%c2_119, %c0_120, %c0_121] : memref<4x128x128xf32, #tpu.memory_space<vmem>>, vector<1x128x128xf32>
    %106 = vector.shape_cast %105 : vector<1x128x128xf32> to vector<128x128xf32>
    %cst_122 = arith.constant dense<0.000000e+00> : vector<8x128xf32>
    %107 = tpu.matmul %104, %106, %cst_122 {dimension_numbers = #tpu.dot_dimension_numbers<[1], [0], [0], [1], [0, 0, 1, 1], [], []>} : vector<8x128xf32>, vector<128x128xf32>, vector<8x128xf32> -> vector<8x128xf32>
    %108 = arith.addf %101, %107 : vector<8x128xf32>
    %c3 = arith.constant 3 : index
    %c0_123 = arith.constant 0 : index
    %c0_124 = arith.constant 0 : index
    %109 = vector.load %arg10[%c3, %c0_123, %c0_124] : memref<4x8x8xf32, #tpu.memory_space<vmem>>, vector<1x8x8xf32>
    %110 = vector.shape_cast %109 : vector<1x8x8xf32> to vector<8x8xf32>
    %cst_125 = arith.constant dense<0.000000e+00> : vector<8x128xf32>
    %111 = tpu.matmul %110, %88, %cst_125 {dimension_numbers = #tpu.dot_dimension_numbers<[1], [0], [0], [1], [0, 0, 1, 1], [], []>} : vector<8x8xf32>, vector<8x128xf32>, vector<8x128xf32> -> vector<8x128xf32>
    %c3_126 = arith.constant 3 : index
    %c0_127 = arith.constant 0 : index
    %c0_128 = arith.constant 0 : index
    %112 = vector.load %arg11[%c3_126, %c0_127, %c0_128] : memref<4x128x128xf32, #tpu.memory_space<vmem>>, vector<1x128x128xf32>
    %113 = vector.shape_cast %112 : vector<1x128x128xf32> to vector<128x128xf32>
    %cst_129 = arith.constant dense<0.000000e+00> : vector<8x128xf32>
    %114 = tpu.matmul %111, %113, %cst_129 {dimension_numbers = #tpu.dot_dimension_numbers<[1], [0], [0], [1], [0, 0, 1, 1], [], []>} : vector<8x128xf32>, vector<128x128xf32>, vector<8x128xf32> -> vector<8x128xf32>
    %115 = arith.addf %108, %114 : vector<8x128xf32>
    %c0_130 = arith.constant 0 : index
    %c0_131 = arith.constant 0 : index
    %116 = vector.load %arg12[%c0_130, %c0_131] : memref<1x128xf32, #tpu.memory_space<vmem>>, vector<1x128xf32>
    %117 = vector.broadcast %116 : vector<1x128xf32> to vector<8x128xf32>
    %118 = arith.addf %115, %117 : vector<8x128xf32>
    %cst_132 = arith.constant 0.000000e+00 : f32
    %119 = vector.broadcast %cst_132 : f32 to vector<8x128xf32>
    %120 = arith.maximumf %118, %119 : vector<8x128xf32>
    %c0_133 = arith.constant 0 : index
    %c0_134 = arith.constant 0 : index
    %121 = vector.load %arg13[%c0_133, %c0_134] : memref<128x128xf32, #tpu.memory_space<vmem>>, vector<128x128xf32>
    %cst_135 = arith.constant dense<0.000000e+00> : vector<8x128xf32>
    %122 = tpu.matmul %120, %121, %cst_135 {dimension_numbers = #tpu.dot_dimension_numbers<[1], [0], [0], [1], [0, 0, 1, 1], [], []>} : vector<8x128xf32>, vector<128x128xf32>, vector<8x128xf32> -> vector<8x128xf32>
    %c0_136 = arith.constant 0 : index
    %c0_137 = arith.constant 0 : index
    %123 = vector.load %arg14[%c0_136, %c0_137] : memref<1x128xf32, #tpu.memory_space<vmem>>, vector<1x128xf32>
    %124 = vector.broadcast %123 : vector<1x128xf32> to vector<8x128xf32>
    %125 = arith.addf %122, %124 : vector<8x128xf32>
    %c0_138 = arith.constant 0 : index
    %c0_139 = arith.constant 0 : index
    %126 = vector.load %arg15[%c0_138, %c0_139] : memref<8x128xf32, #tpu.memory_space<vmem>>, vector<8x128xf32>
    tpu.vector_store %arg15[%c0_138, %c0_139], %125 {strides = array<i32>} : memref<8x128xf32, #tpu.memory_space<vmem>>, vector<8x128xf32>,
    return
  }
}

</mosaic_0001>

<bundles_post_ra>
// kernel: forward.1
= control target key start
LH: loop header
LB: loop body
LE: loop exit
PB: predicated region body
PF: predicated region fallthrough
CT: control target
= control target key end

     0   :  { %20 = vsyncpa [#allocation3], 0  ;;  %s2939_s0 = inlined_call_operand.hbm [shape: f32[96,16], index: 0, kind: input, shape index: {}]   ;;  %s2940_s1 = inlined_call_operand.hbm [shape: f32[3,32,96], index: 1, kind: input, shape index: {}]   ;;  %s2941_s2 = inlined_call_operand.hbm [shape: f32[3,16,256], index: 2, kind: input, shape index: {}]   ;;  %s2942_s3 = inlined_call_operand.hbm [shape: f32[2,16,32], index: 3, kind: input, shape index: {}]   ;;  %s2943_s4 = inlined_call_operand.hbm [shape: f32[2,256,128], index: 4, kind: input, shape index: {}]   ;;  %s2944_s5 = inlined_call_operand.vmem [shape: f32[128,8], index: 5, kind: input, shape index: {}]   ;;  %s2945_s6 = inlined_call_operand.hbm [shape: f32[3,16,16], index: 6, kind: input, shape index: {}]   ;;  %s2946_s7 = inlined_call_operand.hbm [shape: f32[3,8,256], index: 7, kind: input, shape index: {}]   ;;  %s2947_s8 = inlined_call_operand.vmem [shape: f32[2,8,16], index: 8, kind: input, shape index: {}]   ;;  %s2948_s9 = inlined_call_operand.hbm [shape: f32[2,256,128], index: 9, kind: input, shape index: {}]   ;;  %s2949_s10 = inlined_call_operand.hbm [shape: f32[4,8,8], index: 10, kind: input, shape index: {}]   ;;  %s2950_s11 = inlined_call_operand.hbm [shape: f32[4,128,128], index: 11, kind: input, shape index: {}]   ;;  %s2951_s12 = inlined_call_operand.vmem [shape: f32[1,128], index: 12, kind: input, shape index: {}]   ;;  %s2952_s13 = inlined_call_operand.vmem [shape: f32[128,128], index: 13, kind: input, shape index: {}]   ;;  %s2953_s14 = inlined_call_operand.vmem [shape: f32[1,128], index: 14, kind: input, shape index: {}]   ;;  %s2954_s15 = inlined_call_operand.vmem [shape: f32[8,128], index: 15, kind: output, shape index: {}]  }
   0x1   :  { %21 = vsyncpa [#allocation5], 0 }
   0x2   :  { %22 = vsyncpa [#allocation8], 0 }
   0x3   :  { %23 = vsyncpa [#allocation11], 0 }
   0x4   :  { %24 = vsyncpa [#allocation14], 0 }
   0x5   :  { %25 = vsyncpa [#allocation17], 0  ;;  %s43_s20 = sshll.u32 %s2940_s1, 4  ;;  %s2234_s21 = smov [#allocation4]   ;;  %s44_s20 = int_to_ptr.hbm [resolvable:$true] %s43_s20 }
   0x6   :  { %s45_s22 = sshll.u32 %s2234_s21, 4  ;;  %s69_s25 = sshll.u32 %s2942_s3, 4  ;;  %s46_s22 = int_to_ptr.vmem [resolvable:$true] %s45_s22  ;;  %s70_s25 = int_to_ptr.hbm [resolvable:$true] %s69_s25 }
   0x7   :  { %s2235_s26 = smov 128   ;;  %s2236_s27 = smov 8  }
   0x8   :  { %51 = dma.hbm_to_vmem [thread:$0]  %s44_s20, 1536, %s46_s22, [#allocation5], %s2235_s26, %s2235_s26, %s2236_s27  }
   0x9   :  { %s2237_s28 = smov [#allocation7]   ;;  %s97_s1 = sshll.u32 %s2945_s6, 4  ;;  %s98_s1 = int_to_ptr.hbm [resolvable:$true] %s97_s1 }
   0xa   :  { %s71_s29 = sshll.u32 %s2237_s28, 4  ;;  %s125_s18 = sshll.u32 %s2948_s9, 4  ;;  %s72_s29 = int_to_ptr.vmem [resolvable:$true] %s71_s29  ;;  %s126_s18 = int_to_ptr.hbm [resolvable:$true] %s125_s18 }
   0xb   :  { %77 = dma.hbm_to_vmem [thread:$0]  %s70_s25, 512, %s72_s29, [#allocation8], %s2235_s26, %s2235_s26, %s2236_s27  }
   0xc   :  { %s2238_s19 = smov [#allocation10]   ;;  %s2239_s20 = smov [#allocation13]  }
   0xd   :  { %s99_s21 = sshll.u32 %s2238_s19, 4  ;;  %s127_s6 = sshll.u32 %s2239_s20, 4  ;;  %s100_s21 = int_to_ptr.vmem [resolvable:$true] %s99_s21  ;;  %s128_s6 = int_to_ptr.vmem [resolvable:$true] %s127_s6 }
   0xe   :  { %105 = dma.hbm_to_vmem [thread:$0]  %s98_s1, 768, %s100_s21, [#allocation11], %s2235_s26, %s2235_s26, %s2236_s27  }
   0xf   :  { %s30_s24 = sshll.u32 %s2939_s0, 4  ;;  %s56_s28 = sshll.u32 %s2941_s2, 4  ;;  %s31_s24 = int_to_ptr.hbm [resolvable:$true] %s30_s24  ;;  %s57_s28 = int_to_ptr.hbm [resolvable:$true] %s56_s28 }
  0x10   :  { %133 = dma.hbm_to_vmem [thread:$0]  %s126_s18, 8192, %s128_s6, [#allocation14], %s2235_s26, %s2235_s26, %s2236_s27  }
  0x11   :  { %s2240_s29 = smov [#allocation2]   ;;  %s2241_s16 = smov [#allocation6]  }
  0x12   :  { %s32_s30 = sshll.u32 %s2240_s29, 4  ;;  %s58_s0 = sshll.u32 %s2241_s16, 4  ;;  %s33_s30 = int_to_ptr.vmem [resolvable:$true] %s32_s30  ;;  %s59_s0 = int_to_ptr.vmem [resolvable:$true] %s58_s0 }
  0x13   :  { %38 = dma.hbm_to_vmem [thread:$0]  %s31_s24, 1536, %s33_s30, [#allocation3], %s2235_s26, %s2235_s26, %s2236_s27  }
  0x14   :  { %s2242_s1 = smov 256   ;;  %s2243_s3 = smov 16  }
  0x15   :  { %64 = dma.hbm_to_vmem [thread:$0]  %s57_s28, 1536, %s59_s0, [#allocation5], %s2242_s1, %s2242_s1, %s2243_s3  }
  0x16   :  { %s82_s19 = sshll.u32 %s2943_s4, 4  ;;  %s2244_s2 = smov [#allocation9]   ;;  %s83_s19 = int_to_ptr.hbm [resolvable:$true] %s82_s19 }
  0x17   :  { %s84_s21 = sshll.u32 %s2244_s2, 4  ;;  %s110_s22 = sshll.u32 %s2946_s7, 4  ;;  %s85_s21 = int_to_ptr.vmem [resolvable:$true] %s84_s21  ;;  %s111_s22 = int_to_ptr.hbm [resolvable:$true] %s110_s22 }
  0x18   :  { %90 = dma.hbm_to_vmem [thread:$0]  %s83_s19, 8192, %s85_s21, [#allocation8], %s2235_s26, %s2235_s26, %s2236_s27  }
  0x19   :  { %s2245_s23 = smov [#allocation12]   ;;  %s138_s28 = sshll.u32 %s2949_s10, 4  ;;  %s139_s28 = int_to_ptr.hbm [resolvable:$true] %s138_s28 }
  0x1a   :  { %s112_s24 = sshll.u32 %s2245_s23, 4  ;;  %s151_s30 = sshll.u32 %s2950_s11, 4  ;;  %s113_s24 = int_to_ptr.vmem [resolvable:$true] %s112_s24  ;;  %s152_s30 = int_to_ptr.hbm [resolvable:$true] %s151_s30 }
  0x1b   :  { %118 = dma.hbm_to_vmem [thread:$0]  %s111_s22, 768, %s113_s24, [#allocation11], %s2242_s1, %s2242_s1, %s2243_s3  }
  0x1c   :  { %s2246_s16 = smov [#allocation15]   ;;  %s2247_s0 = smov [#allocation16]  }
  0x1d   :  { %s140_s7 = sshll.u32 %s2246_s16, 4  ;;  %s153_s17 = sshll.u32 %s2247_s0, 4  ;;  %s141_s7 = int_to_ptr.vmem [resolvable:$true] %s140_s7  ;;  %s154_s17 = int_to_ptr.vmem [resolvable:$true] %s153_s17 }
  0x1e   :  { %146 = dma.hbm_to_vmem [thread:$0]  %s139_s28, 512, %s141_s7, [#allocation14], %s2235_s26, %s2235_s26, %s2236_s27  }
  0x1f   :  { %159 = dma.hbm_to_vmem [thread:$0]  %s152_s30, 8192, %s154_s17, [#allocation17], %s2235_s26, %s2235_s26, %s2236_s27  }
  0x20   :  { %2222 = dma.done.wait [#allocation3], 1536  }
  0x21   :  { %2223 = vsyncadd [#allocation3], 4294965760 }
  0x22   :  { %2224 = dma.done.wait [#allocation5], 3072  }
  0x23   :  { %2225 = vsyncadd [#allocation5], 4294964224 }
  0x24   :  { %2226 = dma.done.wait [#allocation8], 8704  }
  0x25   :  { %2227 = vsyncadd [#allocation8], 4294958592 }
  0x26   :  { %2228 = dma.done.wait [#allocation11], 1536  }
  0x27   :  { %2229 = vsyncadd [#allocation11], 4294965760 }
  0x28   :  { %2230 = dma.done.wait [#allocation14], 8704  }
  0x29   :  { %2231 = vsyncadd [#allocation14], 4294958592 }
  0x2a   :  { %2232 = dma.done.wait [#allocation17], 8192  }
  0x2b   :  { %2233 = vsyncadd [#allocation17], 4294959104  ;;  %v217_v0 = vld [vmem:[#allocation2 + $0x58] sm:$0xff]  ;;  %v216_v1 = vld [vmem:[#allocation2 + $0x50] sm:$0xff]  ;;  %vm222_vm0 = vcmask 785408   ;;  %vm319_vm1 = vcmask 130048  }
  0x2c   :  { %239 = vmatpush.msra.mxu0 %v217_v0  ;;  %289 = vmatpush.msra.mxu1 %v217_v0  ;;  %v215_v2 = vld [vmem:[#allocation2 + $0x48] sm:$0xff]  ;;  %v214_v3 = vld [vmem:[#allocation2 + $0x40] sm:$0xff]  ;;  %v213_v4 = vld [vmem:[#allocation2 + $0x38] sm:$0xff]  ;;  %vm599_vm2 = vcmask 261120   ;;  %vm1069_vm3 = vcmask 64512  }
  0x2d   :  { %v212_v5 = vld [vmem:[#allocation2 + $0x30] sm:$0xff]  ;;  %v211_v6 = vld [vmem:[#allocation2 + $0x28] sm:$0xff]  ;;  %v210_v7 = vld [vmem:[#allocation2 + $0x20] sm:$0xff] }
  0x2e   :  { %240 = vmatpush.msra.mxu0 %v216_v1  ;;  %290 = vmatpush.msra.mxu1 %v216_v1  ;;  %v209_v8 = vld [vmem:[#allocation2 + $0x18] sm:$0xff]  ;;  %v208_v9 = vld [vmem:[#allocation2 + $0x10] sm:$0xff]  ;;  %v207_v10 = vld [vmem:[#allocation2 + $0x8] sm:$0xff] }
  0x2f   :  { %v206_v11 = vld [vmem:[#allocation2] sm:$0xff]  ;;  %v219_v14 = vld [vmem:[#allocation4 + $0x8] sm:$0xff]  ;;  %v220_v16 = vld [vmem:[#allocation4 + $0x10] sm:$0xff] }
  0x30   :  { %241 = vmatpush.msra.mxu0 %v215_v2  ;;  %291 = vmatpush.msra.mxu1 %v215_v2  ;;  %v218_v12 = vld [vmem:[#allocation4] sm:$0xff]  ;;  %v270_v15 = vld [vmem:[#allocation4 + $0x28] sm:$0xff]  ;;  %v271_v17 = vld [vmem:[#allocation4 + $0x30] sm:$0xff] }
  0x31   :  { %v269_v13 = vld [vmem:[#allocation4 + $0x20] sm:$0xff]  ;;  %v221_v18 = vld [vmem:[#allocation4 + $0x18] sm:$0xff]  ;;  %v317_v20 = vld [vmem:[#allocation6 + $0x30] sm:$0xff] }
  0x32   :  { %242 = vmatpush.msra.mxu0 %v214_v3  ;;  %292 = vmatpush.msra.mxu1 %v214_v3  ;;  %v272_v19 = vld [vmem:[#allocation4 + $0x38] sm:$0xff]  ;;  %v461_v21 = vld [vmem:[#allocation4 + $0x40] sm:$0xff]  ;;  %v462_v22 = vld [vmem:[#allocation4 + $0x48] sm:$0xff] }
  0x33   :  { %346 = vmatpush.msra.mxu2 %v317_v20  ;;  %1962 = vmatpush.msra.mxu3 %v317_v20  ;;  %v463_v23 = vld [vmem:[#allocation4 + $0x50] sm:$0xff]  ;;  %v464_v24 = vld [vmem:[#allocation4 + $0x58] sm:$0xff]  ;;  %v315_v25 = vld [vmem:[#allocation6 + $0x20] sm:$0xff] }
  0x34   :  { %243 = vmatpush.msra.mxu0 %v213_v4  ;;  %293 = vmatpush.msra.mxu1 %v213_v4  ;;  %v266_v26 = vld [vmem:[#allocation6 + $0x10] sm:$0xff]  ;;  %v264_v27 = vld [vmem:[#allocation6] sm:$0xff]  ;;  %v318_v28 = vld [vmem:[#allocation6 + $0x38] sm:$0xff] }
  0x35   :  { %347 = vmatpush.msra.mxu2 %v315_v25  ;;  %1963 = vmatpush.msra.mxu3 %v315_v25  ;;  %v509_v29 = vld [vmem:[#allocation6 + $0x50] sm:$0xff]  ;;  %v316_v30 = vld [vmem:[#allocation6 + $0x28] sm:$0xff]  ;;  %v507_v31 = vld [vmem:[#allocation6 + $0x40] sm:$0xff] }
  0x36   :  { %244 = vmatpush.msra.mxu0 %v212_v5  ;;  %294 = vmatpush.msra.mxu1 %v212_v5  ;;  %v510_v36 = vld [vmem:[#allocation6 + $0x58] sm:$0xff]  ;;  %v508_v40 = vld [vmem:[#allocation6 + $0x48] sm:$0xff]  ;;  %v2421_v49 = vld [vmem:[#allocation9 + $0x70] sm:$0xff] }
  0x37   :  { %416 = vmatpush.msrb.mxu2 %v266_v26  ;;  %375 = vmatpush.msrb.mxu3 %v318_v28  ;;  %v267_v37 = vld [vmem:[#allocation6 + $0x18] sm:$0xff]  ;;  %v265_v43 = vld [vmem:[#allocation6 + $0x8] sm:$0xff]  ;;  %v2427_v51 = vld [vmem:[#allocation9 + $0x60] sm:$0xff] }
  0x38   :  { %245 = vmatpush.msra.mxu0 %v211_v6  ;;  %295 = vmatpush.msra.mxu1 %v211_v6  ;;  %v2418_v48 = vld [vmem:[#allocation9 + $0x78] sm:$0xff]  ;;  %v2424_v50 = vld [vmem:[#allocation9 + $0x68] sm:$0xff]  ;;  %v2435_v54 = vld [vmem:[#allocation9 + $0x50] sm:$0xff] }
  0x39   :  { %417 = vmatpush.msrb.mxu2 %v264_v27  ;;  %376 = vmatpush.msrb.mxu3 %v316_v30  ;;  %v2432_v53 = vld [vmem:[#allocation9 + $0x58] sm:$0xff]  ;;  %v2438_v55 = vld [vmem:[#allocation9 + $0x48] sm:$0xff]  ;;  %v2441_v56 = vld [vmem:[#allocation9 + $0x40] sm:$0xff] }
  0x3a   :  { %246 = vmatpush.msra.mxu0 %v210_v7  ;;  %296 = vmatpush.msra.mxu1 %v210_v7  ;;  %v2444_v58 = vld [vmem:[#allocation9 + $0x38] sm:$0xff]  ;;  %v2447_v59 = vld [vmem:[#allocation9 + $0x30] sm:$0xff]  ;;  %v2450_v60 = vld [vmem:[#allocation9 + $0x28] sm:$0xff] }
  0x3b   :  { %v2453_v61 = vld [vmem:[#allocation9 + $0x20] sm:$0xff]  ;;  %v2456_v63 = vld [vmem:[#allocation9 + $0x18] sm:$0xff]  ;;  %v2499_v25 = vld [vmem:[#allocation9 + $0xb0] sm:$0xff] }
  0x3c   :  { %247 = vmatpush.msra.mxu0 %v209_v8  ;;  %297 = vmatpush.msra.mxu1 %v209_v8  ;;  %v2502_v30 = vld [vmem:[#allocation9 + $0xa8] sm:$0xff] }
  0x3e   :  { %248 = vmatpush.msra.mxu0 %v208_v9  ;;  %298 = vmatpush.msra.mxu1 %v208_v9 }
  0x40   :  { %249 = vmatpush.msra.mxu0 %v207_v10  ;;  %299 = vmatpush.msra.mxu1 %v207_v10 }
  0x42   :  { %250 = vmatpush.msra.mxu0 %v206_v11  ;;  %300 = vmatpush.msra.mxu1 %v206_v11 }
  0x43   :  { %1891 = vmatmul.msk.f32.vlgmr.msra.gmra.mxu0 %vm222_vm0, %v218_v12  ;;  %1895 = vmatmul.msk.f32.vlgmr.msra.gmra.mxu1 %vm222_vm0, %v269_v13  ;;  %v2479_v13 = vld [vmem:[#allocation9 + $0xe0] sm:$0xff] }
  0x44   :  { %481 = vmatpush.msrb.mxu0 %v217_v0  ;;  %537 = vmatpush.msrb.mxu1 %v509_v29 }
  0x46   :  { %482 = vmatpush.msrb.mxu0 %v216_v1  ;;  %538 = vmatpush.msrb.mxu1 %v507_v31  ;;  %v2459_v1 = vld [vmem:[#allocation9 + $0x10] sm:$0xff]  ;;  %v2505_v31 = vld [vmem:[#allocation9 + $0xa0] sm:$0xff] }
  0x48   :  { %483 = vmatpush.msrb.mxu0 %v215_v2  ;;  %v2462_v2 = vld [vmem:[#allocation9 + $0x8] sm:$0xff] }
  0x4a   :  { %484 = vmatpush.msrb.mxu0 %v214_v3  ;;  %v2465_v3 = vld [vmem:[#allocation9] sm:$0xff] }
  0x4b   :  { %1892 = vmatmul.msk.f32.gmra.mxu0 %vm222_vm0, %v219_v14  ;;  %1896 = vmatmul.msk.f32.gmra.mxu1 %vm222_vm0, %v270_v15  ;;  %v2484_v15 = vld [vmem:[#allocation9 + $0xd8] sm:$0xff] }
  0x4c   :  { %485 = vmatpush.msrb.mxu0 %v213_v4 }
  0x4e   :  { %486 = vmatpush.msrb.mxu0 %v212_v5 }
  0x50   :  { %487 = vmatpush.msrb.mxu0 %v211_v6 }
  0x52   :  { %488 = vmatpush.msrb.mxu0 %v210_v7 }
  0x53   :  { %1893 = vmatmul.msk.f32.gmra.mxu0 %vm222_vm0, %v220_v16  ;;  %1897 = vmatmul.msk.f32.gmra.mxu1 %vm222_vm0, %v271_v17  ;;  %v2487_v16 = vld [vmem:[#allocation9 + $0xd0] sm:$0xff] }
  0x54   :  { %489 = vmatpush.msrb.mxu0 %v209_v8  ;;  %v2470_v8 = vld [vmem:[#allocation9 + $0xf8] sm:$0xff] }
  0x55   :  { %707 = vmatpush.msra.mxu1 %v2470_v8 }
  0x56   :  { %490 = vmatpush.msrb.mxu0 %v208_v9  ;;  %v2473_v9 = vld [vmem:[#allocation9 + $0xf0] sm:$0xff] }
  0x57   :  { %708 = vmatpush.msra.mxu1 %v2473_v9 }
  0x58   :  { %491 = vmatpush.msrb.mxu0 %v207_v10 }
  0x5a   :  { %492 = vmatpush.msrb.mxu0 %v206_v11  ;;  %v2476_v11 = vld [vmem:[#allocation9 + $0xe8] sm:$0xff] }
  0x5b   :  { %1894 = vmatmul.msk.f32.gmra.mxu0 %vm222_vm0, %v221_v18  ;;  %1898 = vmatmul.msk.f32.gmra.mxu1 %vm222_vm0, %v272_v19  ;;  %v2490_v18 = vld [vmem:[#allocation9 + $0xc8] sm:$0xff]  ;;  %v2493_v19 = vld [vmem:[#allocation9 + $0xc0] sm:$0xff] }
  0x5c   :  { %684 = vmatpush.msra.mxu0 %v2418_v48  ;;  %709 = vmatpush.msra.mxu1 %v2476_v11 }
  0x5e   :  { %685 = vmatpush.msra.mxu0 %v2421_v49  ;;  %710 = vmatpush.msra.mxu1 %v2479_v13 }
  0x60   :  { %686 = vmatpush.msra.mxu0 %v2424_v50  ;;  %711 = vmatpush.msra.mxu1 %v2484_v15 }
  0x62   :  { %687 = vmatpush.msra.mxu0 %v2427_v51  ;;  %712 = vmatpush.msra.mxu1 %v2487_v16 }
  0x63   :  { %1915 = vmatmul.msk.f32.vlgmr.msrb.gmra.mxu0 %vm222_vm0, %v461_v21 }
  0x64   :  { %688 = vmatpush.msra.mxu0 %v2432_v53  ;;  %713 = vmatpush.msra.mxu1 %v2490_v18 }
  0x66   :  { %689 = vmatpush.msra.mxu0 %v2435_v54  ;;  %714 = vmatpush.msra.mxu1 %v2493_v19 }
  0x68   :  { %690 = vmatpush.msra.mxu0 %v2438_v55 }
  0x6a   :  { %691 = vmatpush.msra.mxu0 %v2441_v56 }
  0x6b   :  { %1916 = vmatmul.msk.f32.gmra.mxu0 %vm222_vm0, %v462_v22  ;;  %v2496_v22 = vld [vmem:[#allocation9 + $0xb8] sm:$0xff] }
  0x6c   :  { %692 = vmatpush.msra.mxu0 %v2444_v58  ;;  %715 = vmatpush.msra.mxu1 %v2496_v22 }
  0x6e   :  { %693 = vmatpush.msra.mxu0 %v2447_v59  ;;  %716 = vmatpush.msra.mxu1 %v2499_v25 }
  0x70   :  { %694 = vmatpush.msra.mxu0 %v2450_v60  ;;  %717 = vmatpush.msra.mxu1 %v2502_v30 }
  0x72   :  { %695 = vmatpush.msra.mxu0 %v2453_v61  ;;  %718 = vmatpush.msra.mxu1 %v2505_v31 }
  0x73   :  { %1917 = vmatmul.msk.f32.gmra.mxu0 %vm222_vm0, %v463_v23 }
  0x74   :  { %696 = vmatpush.msra.mxu0 %v2456_v63 }
  0x76   :  { %697 = vmatpush.msra.mxu0 %v2459_v1 }
  0x78   :  { %698 = vmatpush.msra.mxu0 %v2462_v2 }
  0x7a   :  { %699 = vmatpush.msra.mxu0 %v2465_v3 }
  0x7b   :  { %1918 = vmatmul.msk.f32.gmra.mxu0 %vm222_vm0, %v464_v24 }
  0xc0   :  { %v252_v32 = vpop.f32.mrf.mxu0  ;;  %v302_v33 = vpop.f32.mrf.mxu1 }
  0xc1   :  { %1899 = vmatmul.msk.f32.vlgmr.msra.gmra.mxu2 %vm319_vm1, %v302_v33 }
  0xc2   :  { %566 = vmatpush.msra.mxu2 %v510_v36 }
  0xc4   :  { %567 = vmatpush.msra.mxu2 %v508_v40  ;;  %v2512_v40 = vld [vmem:[#allocation9 + $0x90] sm:$0xff] }
  0xc8   :  { %v255_v34 = vpop.f32.mrf.mxu0  ;;  %v305_v35 = vpop.f32.mrf.mxu1 }
  0xc9   :  { %1900 = vmatmul.msk.f32.gmra.mxu2 %vm319_vm1, %v305_v35 }
  0xd0   :  { %v258_v38 = vpop.f32.mrf.mxu0  ;;  %v308_v39 = vpop.f32.mrf.mxu1 }
  0xd1   :  { %1901 = vmatmul.msk.f32.vlgmr.msra.gmra.mxu3 %vm319_vm1, %v308_v39  ;;  %1907 = vmatmul.msk.f32.vlgmr.msrb.gmra.mxu2 %vm319_vm1, %v252_v32 }
  0xd2   :  { %445 = vmatpush.msra.mxu3 %v267_v37 }
  0xd4   :  { %446 = vmatpush.msra.mxu3 %v265_v43  ;;  %v2515_v43 = vld [vmem:[#allocation7] sm:$0xff] }
  0xd8   :  { %v261_v41 = vpop.f32.mrf.mxu0  ;;  %v311_v42 = vpop.f32.mrf.mxu1 }
  0xd9   :  { %1902 = vmatmul.msk.f32.gmra.mxu3 %vm319_vm1, %v311_v42  ;;  %1908 = vmatmul.msk.f32.gmra.mxu2 %vm319_vm1, %v255_v34 }
  0xe0   :  { %v494_v44 = vpop.f32.mrf.mxu0 }
  0xe1   :  { %1903 = vmatmul.msk.f32.vlgmr.msrb.gmra.mxu3 %vm319_vm1, %v302_v33  ;;  %1909 = vmatmul.msk.f32.gmra.mxu2 %vm319_vm1, %v258_v38 }
  0xe2   :  { %1919 = vmatmul.msk.f32.vlgmr.msrb.gmra.mxu1 %vm319_vm1, %v494_v44 }
  0xe8   :  { %v497_v45 = vpop.f32.mrf.mxu0 }
  0xe9   :  { %1904 = vmatmul.msk.f32.gmra.mxu3 %vm319_vm1, %v305_v35  ;;  %1910 = vmatmul.msk.f32.gmra.mxu2 %vm319_vm1, %v261_v41 }
  0xea   :  { %1920 = vmatmul.msk.f32.gmra.mxu1 %vm319_vm1, %v497_v45 }
  0xf0   :  { %v500_v46 = vpop.f32.mrf.mxu0 }
  0xf1   :  { %1905 = vmatmul.msk.f32.gmra.mxu3 %vm319_vm1, %v308_v39  ;;  %1923 = vmatmul.msk.f32.vlgmr.msra.gmra.mxu2 %vm319_vm1, %v494_v44  ;;  %v2517_v44 = vld [vmem:[#allocation9 + $0x88] sm:$0xff] }
  0xf2   :  { %1921 = vmatmul.msk.f32.gmra.mxu1 %vm319_vm1, %v500_v46 }
  0xf8   :  { %v503_v47 = vpop.f32.mrf.mxu0 }
  0xf9   :  { %1906 = vmatmul.msk.f32.gmra.mxu3 %vm319_vm1, %v311_v42  ;;  %1924 = vmatmul.msk.f32.gmra.mxu2 %vm319_vm1, %v497_v45  ;;  %v2520_v45 = vld [vmem:[#allocation9 + $0x80] sm:$0xff] }
  0xfa   :  { %1922 = vmatmul.msk.f32.gmra.mxu1 %vm319_vm1, %v503_v47 }
 0x101   :  { %1911 = vmatmul.msk.f32.vlgmr.msra.gmra.mxu3 %vm319_vm1, %v252_v32  ;;  %1925 = vmatmul.msk.f32.gmra.mxu2 %vm319_vm1, %v500_v46 }
 0x109   :  { %1912 = vmatmul.msk.f32.gmra.mxu3 %vm319_vm1, %v255_v34  ;;  %1926 = vmatmul.msk.f32.gmra.mxu2 %vm319_vm1, %v503_v47  ;;  %v2525_v47 = vld [vmem:[#allocation7 + $0x8] sm:$0xff] }
 0x111   :  { %1913 = vmatmul.msk.f32.gmra.mxu3 %vm319_vm1, %v258_v38  ;;  %v2509_v38 = vld [vmem:[#allocation9 + $0x98] sm:$0xff] }
 0x112   :  { %719 = vmatpush.msra.mxu1 %v2509_v38 }
 0x114   :  { %720 = vmatpush.msra.mxu1 %v2512_v40 }
 0x116   :  { %721 = vmatpush.msra.mxu1 %v2517_v44 }
 0x118   :  { %722 = vmatpush.msra.mxu1 %v2520_v45 }
 0x119   :  { %1914 = vmatmul.msk.f32.gmra.mxu3 %vm319_vm1, %v261_v41 }
 0x144   :  { %v2430_v52 = vpop.f32.mrf.mxu2 }
 0x14c   :  { %v352_v57 = vpop.f32.mrf.mxu2 }
 0x154   :  { %v355_v62 = vpop.f32.mrf.mxu3  ;;  %v419_v0 = vpop.f32.mrf.mxu2 }
 0x155   :  { %v420_v32 = vadd.f32 %v419_v0, %v2430_v52  ;;  %v2531_v0 = vld [vmem:[#allocation9 + $0x170] sm:$0xff] }
 0x15c   :  { %v358_v4 = vpop.f32.mrf.mxu3  ;;  %v422_v5 = vpop.f32.mrf.mxu2 }
 0x15d   :  { %v423_v27 = vadd.f32 %v422_v5, %v352_v57 }
 0x15f   :  { %v540_v6 = vpop.f32.mrf.mxu1 }
 0x160   :  { %v581_v35 = vadd.f32 %v540_v6, %v420_v32  ;;  %v2534_v6 = vld [vmem:[#allocation9 + $0x168] sm:$0xff] }
 0x162   :  { %v589_v41 = vmax.f32 %v581_v35, 0.0 }
 0x164   :  { %v2468_v7 = vpop.f32.mrf.mxu3  ;;  %v425_v12 = vpop.f32.mrf.mxu2 }
 0x165   :  { %v426_v23 = vadd.f32 %v425_v12, %v355_v62  ;;  %v2529_v62 = vld [vmem:[#allocation9 + $0x178] sm:$0xff] }
 0x166   :  { %763 = vmatpush.msrb.mxu2 %v2529_v62  ;;  %v2540_v12 = vld [vmem:[#allocation9 + $0x158] sm:$0xff] }
 0x167   :  { %v543_v10 = vpop.f32.mrf.mxu1 }
 0x168   :  { %v583_v33 = vadd.f32 %v543_v10, %v423_v27  ;;  %764 = vmatpush.msrb.mxu2 %v2531_v0  ;;  %v2537_v10 = vld [vmem:[#allocation9 + $0x160] sm:$0xff] }
 0x16a   :  { %v591_v39 = vmax.f32 %v583_v33, 0.0  ;;  %765 = vmatpush.msrb.mxu2 %v2534_v6 }
 0x16c   :  { %v2482_v14 = vpop.f32.mrf.mxu3  ;;  %v428_v20 = vpop.f32.mrf.mxu2  ;;  %766 = vmatpush.msrb.mxu2 %v2537_v10 }
 0x16d   :  { %v429_v24 = vadd.f32 %v428_v20, %v358_v4 }
 0x16e   :  { %767 = vmatpush.msrb.mxu2 %v2540_v12 }
 0x16f   :  { %v546_v17 = vpop.f32.mrf.mxu1 }
 0x170   :  { %v585_v28 = vadd.f32 %v546_v17, %v426_v23  ;;  %v2543_v17 = vld [vmem:[#allocation9 + $0x150] sm:$0xff] }
 0x171   :  { %768 = vmatpush.msrb.mxu2 %v2543_v17 }
 0x172   :  { %v593_v36 = vmax.f32 %v585_v28, 0.0 }
 0x174   :  { %v384_v21 = vpop.f32.mrf.mxu3  ;;  %v569_v42 = vpop.f32.mrf.mxu2 }
 0x177   :  { %v549_v26 = vpop.f32.mrf.mxu1 }
 0x178   :  { %v587_v29 = vadd.f32 %v549_v26, %v429_v24  ;;  %v2546_v24 = vld [vmem:[#allocation9 + $0x148] sm:$0xff] }
 0x179   :  { %769 = vmatpush.msrb.mxu2 %v2546_v24 }
 0x17a   :  { %v595_v34 = vmax.f32 %v587_v29, 0.0  ;;  %v2550_v29 = vld [vmem:[#allocation9 + $0x140] sm:$0xff] }
 0x17b   :  { %770 = vmatpush.msrb.mxu2 %v2550_v29 }
 0x17c   :  { %618 = vmatpush.msrb.mxu3 %v595_v34  ;;  %830 = vmatpush.msrb.mxu0 %v595_v34  ;;  %v387_v37 = vpop.f32.mrf.mxu3  ;;  %v572_v52 = vpop.f32.mrf.mxu2 }
 0x17e   :  { %619 = vmatpush.msrb.mxu3 %v593_v36  ;;  %831 = vmatpush.msrb.mxu0 %v593_v36  ;;  %v2555_v36 = vld [vmem:[#allocation9 + $0x138] sm:$0xff] }
 0x17f   :  { %771 = vmatpush.msrb.mxu2 %v2555_v36 }
 0x180   :  { %620 = vmatpush.msrb.mxu3 %v591_v39  ;;  %832 = vmatpush.msrb.mxu0 %v591_v39 }
 0x182   :  { %621 = vmatpush.msrb.mxu3 %v589_v41  ;;  %833 = vmatpush.msrb.mxu0 %v589_v41 }
 0x183   :  { %1927 = vmatmul.msk.f32.vlgmr.msrb.gmra.mxu3 %vm599_vm2, %v2515_v43 }
 0x184   :  { %v448_v46 = vpop.f32.mrf.mxu3  ;;  %v575_v4 = vpop.f32.mrf.mxu2 }
 0x185   :  { %v449_v32 = vadd.f32 %v448_v46, %v2468_v7  ;;  %v2560_v7 = vld [vmem:[#allocation9 + $0x128] sm:$0xff] }
 0x187   :  { %v582_v39 = vadd.f32 %v569_v42, %v449_v32  ;;  %v2565_v42 = vld [vmem:[#allocation9 + $0x1f8] sm:$0xff]  ;;  %v2595_v32 = vld [vmem:[#allocation9 + $0x100] sm:$0xff] }
 0x189   :  { %v590_v46 = vmax.f32 %v582_v39, 0.0  ;;  %v750_v39 = vld [vmem:[#allocation9 + $0x198] sm:$0xff] }
 0x18b   :  { %1928 = vmatmul.msk.f32.gmra.mxu3 %vm599_vm2, %v2525_v47 }
 0x18c   :  { %v451_v57 = vpop.f32.mrf.mxu3  ;;  %v578_v28 = vpop.f32.mrf.mxu2 }
 0x18d   :  { %v452_v26 = vadd.f32 %v451_v57, %v2482_v14  ;;  %v2568_v57 = vld [vmem:[#allocation9 + $0x118] sm:$0xff] }
 0x194   :  { %v454_v5 = vpop.f32.mrf.mxu3 }
 0x195   :  { %v455_v20 = vadd.f32 %v454_v5, %v384_v21  ;;  %v584_v21 = vadd.f32 %v572_v52, %v452_v26  ;;  %v2563_v52 = vld [vmem:[#allocation9 + $0x120] sm:$0xff]  ;;  %v2576_v5 = vld [vmem:[#allocation9 + $0x110] sm:$0xff] }
 0x196   :  { %v2584_v26 = vld [vmem:[#allocation9 + $0x1e0] sm:$0xff] }
 0x197   :  { %v586_v33 = vadd.f32 %v575_v4, %v455_v20  ;;  %v592_v41 = vmax.f32 %v584_v21, 0.0  ;;  %v2572_v4 = vld [vmem:[#allocation9 + $0x1f0] sm:$0xff]  ;;  %v2578_v20 = vld [vmem:[#allocation9 + $0x1e8] sm:$0xff] }
 0x198   :  { %v753_v21 = vld [vmem:[#allocation9 + $0x1b0] sm:$0xff] }
 0x199   :  { %v594_v14 = vmax.f32 %v586_v33, 0.0  ;;  %v755_v33 = vld [vmem:[#allocation9 + $0x1c0] sm:$0xff] }
 0x19c   :  { %v457_v23 = vpop.f32.mrf.mxu3 }
 0x19d   :  { %v458_v27 = vadd.f32 %v457_v23, %v387_v37  ;;  %v2557_v37 = vld [vmem:[#allocation9 + $0x130] sm:$0xff]  ;;  %v2582_v23 = vld [vmem:[#allocation9 + $0x108] sm:$0xff] }
 0x19e   :  { %772 = vmatpush.msrb.mxu2 %v2557_v37 }
 0x19f   :  { %v588_v34 = vadd.f32 %v578_v28, %v458_v27  ;;  %v757_v27 = vld [vmem:[#allocation9 + $0x1d0] sm:$0xff]  ;;  %v756_v28 = vld [vmem:[#allocation9 + $0x1c8] sm:$0xff] }
 0x1a0   :  { %773 = vmatpush.msrb.mxu2 %v2560_v7 }
 0x1a1   :  { %v596_v35 = vmax.f32 %v588_v34, 0.0  ;;  %v754_v34 = vld [vmem:[#allocation9 + $0x1b8] sm:$0xff] }
 0x1a2   :  { %774 = vmatpush.msrb.mxu2 %v2563_v52 }
 0x1a3   :  { %641 = vmatpush.msra.mxu3 %v596_v35  ;;  %853 = vmatpush.msrb.mxu1 %v596_v35  ;;  %v752_v35 = vld [vmem:[#allocation9 + $0x1a8] sm:$0xff] }
 0x1a4   :  { %775 = vmatpush.msrb.mxu2 %v2568_v57 }
 0x1a5   :  { %642 = vmatpush.msra.mxu3 %v594_v14  ;;  %854 = vmatpush.msrb.mxu1 %v594_v14  ;;  %v749_v14 = vld [vmem:[#allocation9 + $0x190] sm:$0xff] }
 0x1a6   :  { %776 = vmatpush.msrb.mxu2 %v2576_v5 }
 0x1a7   :  { %643 = vmatpush.msra.mxu3 %v592_v41  ;;  %855 = vmatpush.msrb.mxu1 %v592_v41  ;;  %v748_v41 = vld [vmem:[#allocation9 + $0x188] sm:$0xff] }
 0x1a8   :  { %777 = vmatpush.msrb.mxu2 %v2582_v23 }
 0x1a9   :  { %644 = vmatpush.msra.mxu3 %v590_v46  ;;  %856 = vmatpush.msrb.mxu1 %v590_v46 }
 0x1aa   :  { %1929 = vmatmul.msk.f32.vlgmr.msra.gmra.mxu3 %vm599_vm2, %v2515_v43  ;;  %v2588_v43 = vld [vmem:[#allocation9 + $0x1d8] sm:$0xff]  ;;  %778 = vmatpush.msrb.mxu2 %v2595_v32 }
 0x1ab   :  { %786 = vmatpush.msrb.mxu3 %v2565_v42 }
 0x1ac   :  { %864 = vmatpush.msra.mxu2 %v2418_v48 }
 0x1ad   :  { %787 = vmatpush.msrb.mxu3 %v2572_v4 }
 0x1ae   :  { %865 = vmatpush.msra.mxu2 %v2421_v49  ;;  %v747_v49 = vld [vmem:[#allocation9 + $0x180] sm:$0xff] }
 0x1af   :  { %788 = vmatpush.msrb.mxu3 %v2578_v20 }
 0x1b0   :  { %866 = vmatpush.msra.mxu2 %v2424_v50 }
 0x1b1   :  { %789 = vmatpush.msrb.mxu3 %v2584_v26 }
 0x1b2   :  { %1930 = vmatmul.msk.f32.gmra.mxu3 %vm599_vm2, %v2525_v47  ;;  %v751_v47 = vld [vmem:[#allocation9 + $0x1a0] sm:$0xff]  ;;  %867 = vmatpush.msra.mxu2 %v2427_v51  ;;  %v810_v51 = vld [vmem:[#allocation7 + $0x10] sm:$0xff] }
 0x1b3   :  { %790 = vmatpush.msrb.mxu3 %v2588_v43 }
 0x1b4   :  { %868 = vmatpush.msra.mxu2 %v2432_v53  ;;  %v811_v53 = vld [vmem:[#allocation7 + $0x18] sm:$0xff] }
 0x1b5   :  { %791 = vmatpush.msrb.mxu3 %v757_v27 }
 0x1b6   :  { %869 = vmatpush.msra.mxu2 %v2435_v54 }
 0x1b7   :  { %792 = vmatpush.msrb.mxu3 %v756_v28 }
 0x1b8   :  { %870 = vmatpush.msra.mxu2 %v2438_v55 }
 0x1b9   :  { %793 = vmatpush.msrb.mxu3 %v755_v33 }
 0x1ba   :  { %871 = vmatpush.msra.mxu2 %v2441_v56 }
 0x1bb   :  { %794 = vmatpush.msrb.mxu3 %v754_v34 }
 0x1bc   :  { %872 = vmatpush.msra.mxu2 %v2444_v58 }
 0x1bd   :  { %795 = vmatpush.msrb.mxu3 %v753_v21 }
 0x1be   :  { %873 = vmatpush.msra.mxu2 %v2447_v59 }
 0x1bf   :  { %796 = vmatpush.msrb.mxu3 %v752_v35 }
 0x1c0   :  { %874 = vmatpush.msra.mxu2 %v2450_v60 }
 0x1c1   :  { %797 = vmatpush.msrb.mxu3 %v751_v47 }
 0x1c2   :  { %875 = vmatpush.msra.mxu2 %v2453_v61  ;;  %v977_v61 = vld [vmem:[%s2944_s5 + $0x78] sm:$0xff] }
 0x1c3   :  { %798 = vmatpush.msrb.mxu3 %v750_v39 }
 0x1c4   :  { %876 = vmatpush.msra.mxu2 %v2456_v63  ;;  %v976_v63 = vld [vmem:[%s2944_s5 + $0x70] sm:$0xff] }
 0x1c5   :  { %799 = vmatpush.msrb.mxu3 %v749_v14 }
 0x1c6   :  { %877 = vmatpush.msra.mxu2 %v2459_v1  ;;  %v975_v1 = vld [vmem:[%s2944_s5 + $0x68] sm:$0xff] }
 0x1c7   :  { %800 = vmatpush.msrb.mxu3 %v748_v41 }
 0x1c8   :  { %878 = vmatpush.msra.mxu2 %v2462_v2  ;;  %v974_v2 = vld [vmem:[%s2944_s5 + $0x60] sm:$0xff] }
 0x1c9   :  { %801 = vmatpush.msrb.mxu3 %v747_v49 }
 0x1ca   :  { %879 = vmatpush.msra.mxu2 %v2465_v3  ;;  %v973_v3 = vld [vmem:[%s2944_s5 + $0x58] sm:$0xff] }
 0x1cb   :  { %933 = vmatpush.msra.mxu3 %v2565_v42 }
 0x1cd   :  { %934 = vmatpush.msra.mxu3 %v2572_v4 }
 0x1cf   :  { %935 = vmatpush.msra.mxu3 %v2578_v20 }
 0x1d1   :  { %936 = vmatpush.msra.mxu3 %v2584_v26 }
 0x1d3   :  { %937 = vmatpush.msra.mxu3 %v2588_v43 }
 0x1d5   :  { %938 = vmatpush.msra.mxu3 %v757_v27 }
 0x1d7   :  { %939 = vmatpush.msra.mxu3 %v756_v28 }
 0x1d9   :  { %940 = vmatpush.msra.mxu3 %v755_v33 }
 0x1db   :  { %941 = vmatpush.msra.mxu3 %v754_v34  ;;  %v1067_v34 = vld [vmem:[#allocation12 + $0x10] sm:$0xff] }
 0x1dd   :  { %942 = vmatpush.msra.mxu3 %v753_v21 }
 0x1df   :  { %943 = vmatpush.msra.mxu3 %v752_v35 }
 0x1e1   :  { %944 = vmatpush.msra.mxu3 %v751_v47  ;;  %v1001_v47 = vld [vmem:[#allocation10] sm:$0xff] }
 0x1e3   :  { %945 = vmatpush.msra.mxu3 %v750_v39  ;;  %v1002_v39 = vld [vmem:[#allocation10 + $0x8] sm:$0xff] }
 0x1e5   :  { %946 = vmatpush.msra.mxu3 %v749_v14  ;;  %v1035_v14 = vld [vmem:[#allocation10 + $0x10] sm:$0xff] }
 0x1e7   :  { %947 = vmatpush.msra.mxu3 %v748_v41  ;;  %v1036_v41 = vld [vmem:[#allocation10 + $0x18] sm:$0xff] }
 0x1e9   :  { %948 = vmatpush.msra.mxu3 %v747_v49  ;;  %v1033_v49 = vld [vmem:[#allocation12 + $0x8] sm:$0xff] }
 0x206   :  { %v623_v48 = vpop.f32.mrf.mxu3 }
 0x207   :  { %700 = vmatmul.f32.vlgmr.msra.gmra.mxu0 %v623_v48  ;;  %779 = vmatmul.f32.vlgmr.msrb.gmra.mxu2 %v623_v48  ;;  %v1032_v48 = vld [vmem:[#allocation12] sm:$0xff] }
 0x208   :  { %887 = vmatpush.msra.mxu0 %v2470_v8  ;;  %978 = vmatpush.msrb.mxu2 %v977_v61  ;;  %v2717_v61 = vld [vmem:[#allocation13 + $0x78] sm:$0xff] }
 0x20a   :  { %888 = vmatpush.msra.mxu0 %v2473_v9  ;;  %979 = vmatpush.msrb.mxu2 %v976_v63  ;;  %v2719_v63 = vld [vmem:[#allocation13 + $0xf8] sm:$0xff] }
 0x20c   :  { %889 = vmatpush.msra.mxu0 %v2476_v11  ;;  %980 = vmatpush.msrb.mxu2 %v975_v1  ;;  %v972_v11 = vld [vmem:[%s2944_s5 + $0x50] sm:$0xff] }
 0x20d   :  { %v2721_v1 = vld [vmem:[#allocation13 + $0x70] sm:$0xff] }
 0x20e   :  { %v626_v50 = vpop.f32.mrf.mxu3  ;;  %890 = vmatpush.msra.mxu0 %v2479_v13  ;;  %981 = vmatpush.msrb.mxu2 %v974_v2  ;;  %v971_v13 = vld [vmem:[%s2944_s5 + $0x48] sm:$0xff]  ;;  %v2725_v2 = vld [vmem:[#allocation13 + $0xf0] sm:$0xff] }
 0x20f   :  { %703 = vmatmul.f32.gmra.mxu0 %v626_v50  ;;  %782 = vmatmul.f32.gmra.mxu2 %v626_v50  ;;  %v1068_v50 = vld [vmem:[#allocation12 + $0x18] sm:$0xff] }
 0x210   :  { %891 = vmatpush.msra.mxu0 %v2484_v15  ;;  %982 = vmatpush.msrb.mxu2 %v973_v3  ;;  %v970_v15 = vld [vmem:[%s2944_s5 + $0x40] sm:$0xff]  ;;  %v2727_v3 = vld [vmem:[#allocation13 + $0x68] sm:$0xff] }
 0x212   :  { %892 = vmatpush.msra.mxu0 %v2487_v16  ;;  %983 = vmatpush.msrb.mxu2 %v972_v11  ;;  %v969_v16 = vld [vmem:[%s2944_s5 + $0x38] sm:$0xff]  ;;  %v2735_v11 = vld [vmem:[#allocation13 + $0xe0] sm:$0xff] }
 0x214   :  { %893 = vmatpush.msra.mxu0 %v2490_v18  ;;  %984 = vmatpush.msrb.mxu2 %v971_v13  ;;  %v2739_v13 = vld [vmem:[#allocation13 + $0x58] sm:$0xff] }
 0x216   :  { %894 = vmatpush.msra.mxu0 %v2493_v19  ;;  %985 = vmatpush.msrb.mxu2 %v970_v15  ;;  %v2741_v15 = vld [vmem:[#allocation13 + $0xd8] sm:$0xff] }
 0x217   :  { %1931 = vmatmul.msk.f32.vlgmr.msrb.gmra.mxu0 %vm599_vm2, %v810_v51 }
 0x218   :  { %895 = vmatpush.msra.mxu0 %v2496_v22  ;;  %986 = vmatpush.msrb.mxu2 %v969_v16 }
 0x21a   :  { %896 = vmatpush.msra.mxu0 %v2499_v25 }
 0x21c   :  { %897 = vmatpush.msra.mxu0 %v2502_v30  ;;  %v968_v30 = vld [vmem:[%s2944_s5 + $0x30] sm:$0xff] }
 0x21d   :  { %987 = vmatpush.msrb.mxu2 %v968_v30  ;;  %v2759_v30 = vld [vmem:[#allocation13 + $0x40] sm:$0xff] }
 0x21e   :  { %898 = vmatpush.msra.mxu0 %v2505_v31  ;;  %v967_v31 = vld [vmem:[%s2944_s5 + $0x28] sm:$0xff] }
 0x21f   :  { %1932 = vmatmul.msk.f32.gmra.mxu0 %vm599_vm2, %v811_v53  ;;  %988 = vmatpush.msrb.mxu2 %v967_v31  ;;  %v2761_v31 = vld [vmem:[#allocation13 + $0xc0] sm:$0xff] }
 0x220   :  { %899 = vmatpush.msra.mxu0 %v2509_v38  ;;  %v966_v38 = vld [vmem:[%s2944_s5 + $0x20] sm:$0xff] }
 0x221   :  { %989 = vmatpush.msrb.mxu2 %v966_v38  ;;  %v2765_v38 = vld [vmem:[#allocation13 + $0x38] sm:$0xff] }
 0x222   :  { %900 = vmatpush.msra.mxu0 %v2512_v40  ;;  %v965_v40 = vld [vmem:[%s2944_s5 + $0x18] sm:$0xff] }
 0x223   :  { %990 = vmatpush.msrb.mxu2 %v965_v40  ;;  %v2767_v40 = vld [vmem:[#allocation13 + $0xb8] sm:$0xff] }
 0x224   :  { %901 = vmatpush.msra.mxu0 %v2517_v44  ;;  %v964_v44 = vld [vmem:[%s2944_s5 + $0x10] sm:$0xff] }
 0x225   :  { %991 = vmatpush.msrb.mxu2 %v964_v44 }
 0x226   :  { %902 = vmatpush.msra.mxu0 %v2520_v45  ;;  %v963_v45 = vld [vmem:[%s2944_s5 + $0x8] sm:$0xff] }
 0x227   :  { %992 = vmatpush.msrb.mxu2 %v963_v45 }
 0x22d   :  { %v646_v54 = vpop.f32.mrf.mxu3 }
 0x22e   :  { %723 = vmatmul.f32.vlgmr.msra.gmra.mxu1 %v646_v54  ;;  %802 = vmatmul.f32.vlgmr.msrb.gmra.mxu3 %v646_v54 }
 0x22f   :  { %910 = vmatpush.msra.mxu1 %v2529_v62  ;;  %v962_v62 = vld [vmem:[%s2944_s5] sm:$0xff]  ;;  %1091 = vmatpush.msrb.mxu3 %v1067_v34 }
 0x230   :  { %993 = vmatpush.msrb.mxu2 %v962_v62 }
 0x231   :  { %911 = vmatpush.msra.mxu1 %v2531_v0 }
 0x233   :  { %912 = vmatpush.msra.mxu1 %v2534_v6 }
 0x235   :  { %v649_v55 = vpop.f32.mrf.mxu3  ;;  %913 = vmatpush.msra.mxu1 %v2537_v10 }
 0x236   :  { %726 = vmatmul.f32.gmra.mxu1 %v649_v55  ;;  %805 = vmatmul.f32.gmra.mxu3 %v649_v55 }
 0x237   :  { %914 = vmatpush.msra.mxu1 %v2540_v12 }
 0x239   :  { %915 = vmatpush.msra.mxu1 %v2543_v17 }
 0x23b   :  { %916 = vmatpush.msra.mxu1 %v2546_v24 }
 0x23d   :  { %917 = vmatpush.msra.mxu1 %v2550_v29 }
 0x23e   :  { %1933 = vmatmul.msk.f32.vlgmr.msrb.gmra.mxu1 %vm599_vm2, %v810_v51 }
 0x23f   :  { %918 = vmatpush.msra.mxu1 %v2555_v36 }
 0x241   :  { %919 = vmatpush.msra.mxu1 %v2557_v37 }
 0x243   :  { %920 = vmatpush.msra.mxu1 %v2560_v7 }
 0x245   :  { %921 = vmatpush.msra.mxu1 %v2563_v52 }
 0x246   :  { %1934 = vmatmul.msk.f32.gmra.mxu1 %vm599_vm2, %v811_v53 }
 0x247   :  { %922 = vmatpush.msra.mxu1 %v2568_v57 }
 0x249   :  { %923 = vmatpush.msra.mxu1 %v2576_v5 }
 0x24b   :  { %924 = vmatpush.msra.mxu1 %v2582_v23 }
 0x24d   :  { %925 = vmatpush.msra.mxu1 %v2595_v32 }
 0x284   :  { %v701_v56 = vpop.f32.mrf.mxu0 }
 0x28a   :  { %v780_v0 = vpop.f32.mrf.mxu2 }
 0x28c   :  { %v704_v58 = vpop.f32.mrf.mxu0 }
 0x292   :  { %v783_v10 = vpop.f32.mrf.mxu2 }
 0x294   :  { %v835_v59 = vpop.f32.mrf.mxu0 }
 0x295   :  { %880 = vmatmul.f32.vlgmr.msra.gmra.mxu2 %v835_v59  ;;  %926 = vmatmul.f32.vlgmr.msra.gmra.mxu1 %v835_v59  ;;  %v1207_v59 = vld [vmem:[#allocation12 + $0x20] sm:$0xff] }
 0x296   :  { %1166 = vmatpush.msra.mxu2 %v1033_v49 }
 0x29c   :  { %v838_v60 = vpop.f32.mrf.mxu0 }
 0x29d   :  { %883 = vmatmul.f32.gmra.mxu2 %v838_v60  ;;  %929 = vmatmul.f32.gmra.mxu1 %v838_v60  ;;  %v1208_v60 = vld [vmem:[#allocation12 + $0x28] sm:$0xff] }
 0x2ab   :  { %v724_v8 = vpop.f32.mrf.mxu1 }
 0x2ac   :  { %v725_v9 = vadd.f32 %v724_v8, %v701_v56  ;;  %v1175_v56 = vld [vmem:[#allocation10 + $0x20] sm:$0xff]  ;;  %v2729_v8 = vld [vmem:[#allocation13 + $0xe8] sm:$0xff] }
 0x2b1   :  { %v803_v6 = vpop.f32.mrf.mxu3 }
 0x2b2   :  { %v804_v36 = vadd.f32 %v803_v6, %v780_v0  ;;  %v2777_v0 = vld [vmem:[#allocation13 + $0x30] sm:$0xff] }
 0x2b3   :  { %v727_v18 = vpop.f32.mrf.mxu1  ;;  %v2779_v6 = vld [vmem:[#allocation13 + $0xb0] sm:$0xff] }
 0x2b4   :  { %v728_v19 = vadd.f32 %v727_v18, %v704_v58  ;;  %v956_v52 = vmax.f32 %v725_v9, %v804_v36  ;;  %v1176_v58 = vld [vmem:[#allocation10 + $0x28] sm:$0xff]  ;;  %v2733_v9 = vld [vmem:[#allocation13 + $0x60] sm:$0xff]  ;;  %v2747_v18 = vld [vmem:[#allocation13 + $0x50] sm:$0xff] }
 0x2b5   :  { %v2795_v36 = vld [vmem:[#allocation13 + $0x98] sm:$0xff] }
 0x2b9   :  { %v806_v12 = vpop.f32.mrf.mxu3 }
 0x2ba   :  { %v807_v20 = vadd.f32 %v806_v12, %v783_v10  ;;  %v2783_v10 = vld [vmem:[#allocation13 + $0x28] sm:$0xff] }
 0x2bb   :  { %v858_v22 = vpop.f32.mrf.mxu1  ;;  %v2785_v12 = vld [vmem:[#allocation13 + $0xa8] sm:$0xff] }
 0x2bc   :  { %903 = vmatmul.f32.vlgmr.msra.gmra.mxu0 %v858_v22  ;;  %949 = vmatmul.f32.vlgmr.msra.gmra.mxu3 %v858_v22  ;;  %v957_v28 = vmax.f32 %v728_v19, %v807_v20  ;;  %v2749_v19 = vld [vmem:[#allocation13 + $0xd0] sm:$0xff]  ;;  %v2753_v22 = vld [vmem:[#allocation13 + $0x48] sm:$0xff] }
 0x2c3   :  { %v861_v25 = vpop.f32.mrf.mxu1 }
 0x2c4   :  { %906 = vmatmul.f32.gmra.mxu0 %v861_v25  ;;  %952 = vmatmul.f32.gmra.mxu3 %v861_v25  ;;  %v2755_v25 = vld [vmem:[#allocation13 + $0xc8] sm:$0xff] }
 0x312   :  { %v927_v29 = vpop.f32.mrf.mxu1 }
 0x318   :  { %v881_v17 = vpop.f32.mrf.mxu2 }
 0x31a   :  { %v930_v23 = vpop.f32.mrf.mxu1 }
 0x320   :  { %v884_v4 = vpop.f32.mrf.mxu2 }
 0x339   :  { %v904_v24 = vpop.f32.mrf.mxu0 }
 0x33a   :  { %v905_v7 = vadd.f32 %v904_v24, %v881_v17  ;;  %v2789_v17 = vld [vmem:[#allocation13 + $0x20] sm:$0xff] }
 0x33b   :  { %v2791_v24 = vld [vmem:[#allocation13 + $0xa0] sm:$0xff] }
 0x33f   :  { %v950_v37 = vpop.f32.mrf.mxu3 }
 0x340   :  { %v951_v46 = vadd.f32 %v950_v37, %v927_v29  ;;  %v2793_v29 = vld [vmem:[#allocation13 + $0x18] sm:$0xff]  ;;  %v2801_v37 = vld [vmem:[#allocation13 + $0x10] sm:$0xff] }
 0x341   :  { %v907_v5 = vpop.f32.mrf.mxu0 }
 0x342   :  { %v958_v42 = vmax.f32 %v905_v7, %v951_v46  ;;  %v908_v43 = vadd.f32 %v907_v5, %v884_v4  ;;  %v2803_v7 = vld [vmem:[#allocation13 + $0x90] sm:$0xff]  ;;  %v2807_v46 = vld [vmem:[#allocation13 + $0x8] sm:$0xff] }
 0x344   :  { %v960_v57 = vmax.f32 %v956_v52, %v958_v42  ;;  %v2809_v52 = vld [vmem:[#allocation13 + $0x88] sm:$0xff]  ;;  %v2813_v42 = vld [vmem:[#allocation13] sm:$0xff] }
 0x346   :  { %994 = vmatmul.f32.vlgmr.msrb.gmra.mxu2 %v960_v57  ;;  %v2815_v57 = vld [vmem:[#allocation13 + $0x80] sm:$0xff] }
 0x347   :  { %v953_v26 = vpop.f32.mrf.mxu3 }
 0x348   :  { %v954_v27 = vadd.f32 %v953_v26, %v930_v23 }
 0x34a   :  { %v959_v32 = vmax.f32 %v908_v43, %v954_v27 }
 0x34c   :  { %v961_v33 = vmax.f32 %v957_v28, %v959_v32 }
 0x34e   :  { %997 = vmatmul.f32.gmra.mxu2 %v961_v33 }
 0x3c9   :  { %v995_v21 = vpop.f32.mrf.mxu2 }
 0x3d1   :  { %v998_v35 = vpop.f32.mrf.mxu2 }
 0x3d2   :  { %1023 = vmatpush.msrb.mxu0 %v998_v35  ;;  %1964 = vmatpush.msrb.mxu1 %v998_v35 }
 0x3d3   :  { %1197 = vmatpush.msra.mxu3 %v998_v35 }
 0x3d4   :  { %1024 = vmatpush.msrb.mxu0 %v995_v21  ;;  %1965 = vmatpush.msrb.mxu1 %v995_v21 }
 0x3d5   :  { %1198 = vmatpush.msra.mxu3 %v995_v21  ;;  %1935 = vmatmul.msk.f32.vlgmr.msrb.gmra.mxu0 %vm319_vm1, %v1001_v47 }
 0x3d6   :  { %1936 = vmatmul.msk.f32.vlgmr.msrb.gmra.mxu1 %vm319_vm1, %v1002_v39  ;;  %1114 = vmatpush.msra.mxu0 %v1068_v50 }
 0x3d7   :  { %1057 = vmatpush.msra.mxu1 %v998_v35 }
 0x3d8   :  { %1230 = vmatpush.msrb.mxu0 %v1207_v59  ;;  %v2831_v59 = vld [vmem:[#allocation13 + $0x1f0] sm:$0xff] }
 0x3d9   :  { %1058 = vmatpush.msra.mxu1 %v995_v21 }
 0x3db   :  { %1143 = vmatpush.msrb.mxu1 %v1032_v48 }
 0x3de   :  { %1937 = vmatmul.msk.f32.vlgmr.msra.gmra.mxu1 %vm319_vm1, %v1035_v14 }
 0x3df   :  { %1253 = vmatpush.msra.mxu1 %v1208_v60  ;;  %v1399_v60 = vld [vmem:[#allocation13 + $0x168] sm:$0xff] }
 0x3e6   :  { %1938 = vmatmul.msk.f32.gmra.mxu1 %vm319_vm1, %v1036_v41 }
 0x452   :  { %v1026_v51 = vpop.f32.mrf.mxu0 }
 0x453   :  { %v1029_v53 = vpop.f32.mrf.mxu1  ;;  %1943 = vmatmul.msk.f32.vlgmr.msrb.gmra.mxu1 %vm1069_vm3, %v1026_v51  ;;  %1945 = vmatmul.msk.f32.vlgmr.msra.gmra.mxu2 %vm1069_vm3, %v1026_v51 }
 0x454   :  { %1365 = vmatpush.msrb.mxu1 %v2719_v63 }
 0x456   :  { %1366 = vmatpush.msrb.mxu1 %v2725_v2 }
 0x458   :  { %1367 = vmatpush.msrb.mxu1 %v2729_v8 }
 0x45a   :  { %1368 = vmatpush.msrb.mxu1 %v2735_v11 }
 0x45b   :  { %v1060_v54 = vpop.f32.mrf.mxu1  ;;  %1944 = vmatmul.msk.f32.gmra.mxu1 %vm1069_vm3, %v1029_v53  ;;  %1946 = vmatmul.msk.f32.gmra.mxu2 %vm1069_vm3, %v1029_v53 }
 0x45c   :  { %1939 = vmatmul.msk.f32.vlgmr.msrb.gmra.mxu3 %vm1069_vm3, %v1060_v54  ;;  %1941 = vmatmul.msk.f32.vlgmr.msra.gmra.mxu0 %vm1069_vm3, %v1060_v54  ;;  %v1269_v54 = vld [vmem:[%s2947_s8] sm:$0xff] }
 0x45d   :  { %1345 = vmatpush.msra.mxu0 %v2717_v61  ;;  %1369 = vmatpush.msrb.mxu1 %v2741_v15 }
 0x45f   :  { %1346 = vmatpush.msra.mxu0 %v2721_v1  ;;  %1370 = vmatpush.msrb.mxu1 %v2749_v19 }
 0x461   :  { %1347 = vmatpush.msra.mxu0 %v2727_v3  ;;  %1371 = vmatpush.msrb.mxu1 %v2755_v25 }
 0x463   :  { %v1063_v55 = vpop.f32.mrf.mxu1  ;;  %1348 = vmatpush.msra.mxu0 %v2733_v9  ;;  %1372 = vmatpush.msrb.mxu1 %v2761_v31 }
 0x464   :  { %1940 = vmatmul.msk.f32.gmra.mxu3 %vm1069_vm3, %v1063_v55  ;;  %1942 = vmatmul.msk.f32.gmra.mxu0 %vm1069_vm3, %v1063_v55  ;;  %v2823_v55 = vld [vmem:[#allocation13 + $0x178] sm:$0xff] }
 0x465   :  { %1349 = vmatpush.msra.mxu0 %v2739_v13  ;;  %1373 = vmatpush.msrb.mxu1 %v2767_v40 }
 0x467   :  { %1350 = vmatpush.msra.mxu0 %v2747_v18  ;;  %1374 = vmatpush.msrb.mxu1 %v2779_v6 }
 0x469   :  { %1351 = vmatpush.msra.mxu0 %v2753_v22  ;;  %1375 = vmatpush.msrb.mxu1 %v2785_v12 }
 0x46b   :  { %1352 = vmatpush.msra.mxu0 %v2759_v30  ;;  %1376 = vmatpush.msrb.mxu1 %v2791_v24 }
 0x46c   :  { %1947 = vmatmul.msk.f32.vlgmr.msra.gmra.mxu3 %vm319_vm1, %v1175_v56  ;;  %v2825_v56 = vld [vmem:[#allocation13 + $0x1f8] sm:$0xff] }
 0x46d   :  { %1353 = vmatpush.msra.mxu0 %v2765_v38  ;;  %1377 = vmatpush.msrb.mxu1 %v2795_v36 }
 0x46f   :  { %1354 = vmatpush.msra.mxu0 %v2777_v0  ;;  %1378 = vmatpush.msrb.mxu1 %v2803_v7 }
 0x471   :  { %1355 = vmatpush.msra.mxu0 %v2783_v10  ;;  %1379 = vmatpush.msrb.mxu1 %v2809_v52 }
 0x473   :  { %1356 = vmatpush.msra.mxu0 %v2789_v17  ;;  %1380 = vmatpush.msrb.mxu1 %v2815_v57 }
 0x474   :  { %1948 = vmatmul.msk.f32.gmra.mxu3 %vm319_vm1, %v1176_v58  ;;  %v2829_v58 = vld [vmem:[#allocation13 + $0x170] sm:$0xff] }
 0x475   :  { %1357 = vmatpush.msra.mxu0 %v2793_v29 }
 0x477   :  { %1358 = vmatpush.msra.mxu0 %v2801_v37 }
 0x479   :  { %1359 = vmatpush.msra.mxu0 %v2807_v46 }
 0x47b   :  { %1360 = vmatpush.msra.mxu0 %v2813_v42 }
 0x4d0   :  { %v1145_v4 = vpop.f32.mrf.mxu1 }
 0x4d6   :  { %v1168_v26 = vpop.f32.mrf.mxu2 }
 0x4d8   :  { %v1148_v20 = vpop.f32.mrf.mxu1 }
 0x4d9   :  { %v1116_v5 = vpop.f32.mrf.mxu0 }
 0x4da   :  { %v1169_v32 = vadd.f32 %v1168_v26, %v1116_v5  ;;  %v1396_v5 = vld [vmem:[#allocation13 + $0x150] sm:$0xff]  ;;  %v1411_v26 = vld [vmem:[#allocation13 + $0x1c8] sm:$0xff] }
 0x4de   :  { %v1171_v28 = vpop.f32.mrf.mxu2 }
 0x4df   :  { %v2743_v16 = vpop.f32.mrf.mxu3 }
 0x4e0   :  { %v1146_v33 = vadd.f32 %v1145_v4, %v2743_v16  ;;  %v1415_v16 = vld [vmem:[#allocation13 + $0x1e8] sm:$0xff]  ;;  %v1413_v4 = vld [vmem:[#allocation13 + $0x1d8] sm:$0xff] }
 0x4e1   :  { %v1119_v23 = vpop.f32.mrf.mxu0 }
 0x4e2   :  { %v1172_v34 = vadd.f32 %v1171_v28, %v1119_v23  ;;  %v1395_v23 = vld [vmem:[#allocation13 + $0x148] sm:$0xff]  ;;  %v1393_v28 = vld [vmem:[#allocation13 + $0x138] sm:$0xff] }
 0x4e7   :  { %v1096_v44 = vpop.f32.mrf.mxu3 }
 0x4e8   :  { %v1149_v21 = vadd.f32 %v1148_v20, %v1096_v44  ;;  %v1398_v44 = vld [vmem:[#allocation13 + $0x160] sm:$0xff]  ;;  %v1412_v20 = vld [vmem:[#allocation13 + $0x1d0] sm:$0xff] }
 0x4ef   :  { %v1200_v45 = vpop.f32.mrf.mxu3 }
 0x4f0   :  { %1949 = vmatmul.msk.f32.vlgmr.msrb.gmra.mxu0 %vm1069_vm3, %v1200_v45  ;;  %1951 = vmatmul.msk.f32.vlgmr.msra.gmra.mxu1 %vm1069_vm3, %v1200_v45  ;;  %v1414_v45 = vld [vmem:[#allocation13 + $0x1e0] sm:$0xff] }
 0x4f7   :  { %v1203_v62 = vpop.f32.mrf.mxu3 }
 0x4f8   :  { %1950 = vmatmul.msk.f32.gmra.mxu0 %vm1069_vm3, %v1203_v62  ;;  %1952 = vmatmul.msk.f32.gmra.mxu1 %vm1069_vm3, %v1203_v62  ;;  %v1397_v62 = vld [vmem:[#allocation13 + $0x158] sm:$0xff] }
 0x56d   :  { %v1232_v43 = vpop.f32.mrf.mxu0  ;;  %v1255_v27 = vpop.f32.mrf.mxu1 }
 0x56e   :  { %v1261_v39 = vadd.f32 %v1232_v43, %v1146_v33  ;;  %v1262_v14 = vadd.f32 %v1255_v27, %v1169_v32  ;;  %v1394_v43 = vld [vmem:[#allocation13 + $0x140] sm:$0xff]  ;;  %v1409_v32 = vld [vmem:[#allocation13 + $0x1b8] sm:$0xff]  ;;  %v1392_v33 = vld [vmem:[#allocation13 + $0x130] sm:$0xff] }
 0x56f   :  { %v1410_v27 = vld [vmem:[#allocation13 + $0x1c0] sm:$0xff] }
 0x570   :  { %v1265_v51 = vmax.f32 %v1261_v39, 0.0  ;;  %v1266_v53 = vmax.f32 %v1262_v14, 0.0  ;;  %v1406_v39 = vld [vmem:[#allocation13 + $0x1a0] sm:$0xff]  ;;  %v1389_v14 = vld [vmem:[#allocation13 + $0x118] sm:$0xff] }
 0x575   :  { %v1235_v35 = vpop.f32.mrf.mxu0  ;;  %v1258_v47 = vpop.f32.mrf.mxu1 }
 0x576   :  { %v1263_v41 = vadd.f32 %v1235_v35, %v1149_v21  ;;  %v1264_v48 = vadd.f32 %v1258_v47, %v1172_v34  ;;  %v1408_v34 = vld [vmem:[#allocation13 + $0x1b0] sm:$0xff]  ;;  %v1391_v21 = vld [vmem:[#allocation13 + $0x128] sm:$0xff]  ;;  %v1390_v47 = vld [vmem:[#allocation13 + $0x120] sm:$0xff] }
 0x577   :  { %v1407_v35 = vld [vmem:[#allocation13 + $0x1a8] sm:$0xff] }
 0x578   :  { %v1267_v49 = vmax.f32 %v1263_v41, 0.0  ;;  %v1268_v50 = vmax.f32 %v1264_v48, 0.0  ;;  %v1405_v41 = vld [vmem:[#allocation13 + $0x198] sm:$0xff]  ;;  %v1388_v48 = vld [vmem:[#allocation13 + $0x110] sm:$0xff] }
 0x57a   :  { %1287 = vmatpush.msrb.mxu2 %v1267_v49  ;;  %1307 = vmatpush.msrb.mxu3 %v1268_v50 }
 0x57b   :  { %1477 = vmatpush.msrb.mxu0 %v1267_v49  ;;  %1497 = vmatpush.msra.mxu1 %v1268_v50  ;;  %v1404_v49 = vld [vmem:[#allocation13 + $0x190] sm:$0xff]  ;;  %v1387_v50 = vld [vmem:[#allocation13 + $0x108] sm:$0xff] }
 0x57c   :  { %1288 = vmatpush.msrb.mxu2 %v1265_v51  ;;  %1308 = vmatpush.msrb.mxu3 %v1266_v53 }
 0x57d   :  { %1478 = vmatpush.msrb.mxu0 %v1265_v51  ;;  %1498 = vmatpush.msra.mxu1 %v1266_v53  ;;  %v1403_v51 = vld [vmem:[#allocation13 + $0x188] sm:$0xff]  ;;  %v1386_v53 = vld [vmem:[#allocation13 + $0x100] sm:$0xff] }
 0x57e   :  { %1953 = vmatmul.msk.f32.vlgmr.msrb.gmra.mxu2 %vm319_vm1, %v1269_v54  ;;  %1954 = vmatmul.msk.f32.vlgmr.msrb.gmra.mxu3 %vm319_vm1, %v1269_v54  ;;  %v1402_v54 = vld [vmem:[#allocation13 + $0x180] sm:$0xff] }
 0x57f   :  { %1418 = vmatpush.msra.mxu2 %v2823_v55  ;;  %1438 = vmatpush.msra.mxu3 %v2825_v56 }
 0x581   :  { %1419 = vmatpush.msra.mxu2 %v2829_v58  ;;  %1439 = vmatpush.msra.mxu3 %v2831_v59 }
 0x583   :  { %1420 = vmatpush.msra.mxu2 %v1399_v60  ;;  %1440 = vmatpush.msra.mxu3 %v1415_v16 }
 0x585   :  { %1421 = vmatpush.msra.mxu2 %v1398_v44  ;;  %1441 = vmatpush.msra.mxu3 %v1414_v45 }
 0x587   :  { %1422 = vmatpush.msra.mxu2 %v1397_v62  ;;  %1442 = vmatpush.msra.mxu3 %v1413_v4 }
 0x589   :  { %1423 = vmatpush.msra.mxu2 %v1396_v5  ;;  %1443 = vmatpush.msra.mxu3 %v1412_v20 }
 0x58b   :  { %1424 = vmatpush.msra.mxu2 %v1395_v23  ;;  %1444 = vmatpush.msra.mxu3 %v1411_v26 }
 0x58d   :  { %1425 = vmatpush.msra.mxu2 %v1394_v43  ;;  %1445 = vmatpush.msra.mxu3 %v1410_v27 }
 0x58f   :  { %1426 = vmatpush.msra.mxu2 %v1393_v28  ;;  %1446 = vmatpush.msra.mxu3 %v1409_v32 }
 0x591   :  { %1427 = vmatpush.msra.mxu2 %v1392_v33  ;;  %1447 = vmatpush.msra.mxu3 %v1408_v34 }
 0x593   :  { %1428 = vmatpush.msra.mxu2 %v1391_v21  ;;  %1448 = vmatpush.msra.mxu3 %v1407_v35 }
 0x595   :  { %1429 = vmatpush.msra.mxu2 %v1390_v47  ;;  %1449 = vmatpush.msra.mxu3 %v1406_v39 }
 0x597   :  { %1430 = vmatpush.msra.mxu2 %v1389_v14  ;;  %1450 = vmatpush.msra.mxu3 %v1405_v41 }
 0x599   :  { %1431 = vmatpush.msra.mxu2 %v1388_v48  ;;  %1451 = vmatpush.msra.mxu3 %v1404_v49 }
 0x59b   :  { %1432 = vmatpush.msra.mxu2 %v1387_v50  ;;  %1452 = vmatpush.msra.mxu3 %v1403_v51 }
 0x59d   :  { %1433 = vmatpush.msra.mxu2 %v1386_v53  ;;  %1453 = vmatpush.msra.mxu3 %v1402_v54 }
 0x59f   :  { %1543 = vmatpush.msrb.mxu2 %v2823_v55  ;;  %1563 = vmatpush.msrb.mxu3 %v2825_v56 }
 0x5a1   :  { %1544 = vmatpush.msrb.mxu2 %v2829_v58  ;;  %1564 = vmatpush.msrb.mxu3 %v2831_v59  ;;  %v1955_v58 = vld [vmem:[%s2947_s8 + $0x8] sm:$0xff]  ;;  %v1586_v59 = vld [vmem:[#allocation15] sm:$0xff] }
 0x5a3   :  { %1545 = vmatpush.msrb.mxu2 %v1399_v60  ;;  %1565 = vmatpush.msrb.mxu3 %v1415_v16  ;;  %v1749_v60 = vld [vmem:[#allocation16 + $0x178] sm:$0xff]  ;;  %v1660_v16 = vld [vmem:[#allocation16 + $0xc0] sm:$0xff] }
 0x5a5   :  { %1546 = vmatpush.msrb.mxu2 %v1398_v44  ;;  %1566 = vmatpush.msrb.mxu3 %v1414_v45  ;;  %v1748_v44 = vld [vmem:[#allocation16 + $0x170] sm:$0xff]  ;;  %v1618_v45 = vld [vmem:[#allocation16 + $0x40] sm:$0xff] }
 0x5a7   :  { %1547 = vmatpush.msrb.mxu2 %v1397_v62  ;;  %1567 = vmatpush.msrb.mxu3 %v1413_v4  ;;  %v1659_v62 = vld [vmem:[#allocation16 + $0xb8] sm:$0xff]  ;;  %v1747_v4 = vld [vmem:[#allocation16 + $0x168] sm:$0xff] }
 0x5a9   :  { %1548 = vmatpush.msrb.mxu2 %v1396_v5  ;;  %1568 = vmatpush.msrb.mxu3 %v1412_v20  ;;  %v1617_v5 = vld [vmem:[#allocation16 + $0x38] sm:$0xff]  ;;  %v1658_v20 = vld [vmem:[#allocation16 + $0xb0] sm:$0xff] }
 0x5ab   :  { %1549 = vmatpush.msrb.mxu2 %v1395_v23  ;;  %1569 = vmatpush.msrb.mxu3 %v1411_v26  ;;  %v1746_v23 = vld [vmem:[#allocation16 + $0x160] sm:$0xff]  ;;  %v1616_v26 = vld [vmem:[#allocation16 + $0x30] sm:$0xff] }
 0x5ad   :  { %1550 = vmatpush.msrb.mxu2 %v1394_v43  ;;  %1570 = vmatpush.msrb.mxu3 %v1410_v27  ;;  %v1657_v43 = vld [vmem:[#allocation16 + $0xa8] sm:$0xff]  ;;  %v1709_v27 = vld [vmem:[#allocation15 + $0x10] sm:$0xff] }
 0x5af   :  { %1551 = vmatpush.msrb.mxu2 %v1393_v28  ;;  %1571 = vmatpush.msrb.mxu3 %v1409_v32  ;;  %v1745_v28 = vld [vmem:[#allocation16 + $0x158] sm:$0xff] }
 0x5b0   :  { %v1812_v32 = vld [vmem:[#allocation16 + $0x1f8] sm:$0xff] }
 0x5b1   :  { %1552 = vmatpush.msrb.mxu2 %v1392_v33  ;;  %1572 = vmatpush.msrb.mxu3 %v1408_v34  ;;  %v1615_v33 = vld [vmem:[#allocation16 + $0x28] sm:$0xff]  ;;  %v1744_v34 = vld [vmem:[#allocation16 + $0x150] sm:$0xff] }
 0x5b3   :  { %1553 = vmatpush.msrb.mxu2 %v1391_v21  ;;  %1573 = vmatpush.msrb.mxu3 %v1407_v35  ;;  %v1656_v21 = vld [vmem:[#allocation16 + $0xa0] sm:$0xff]  ;;  %v1811_v35 = vld [vmem:[#allocation16 + $0x1f0] sm:$0xff] }
 0x5b5   :  { %1554 = vmatpush.msrb.mxu2 %v1390_v47  ;;  %1574 = vmatpush.msrb.mxu3 %v1406_v39  ;;  %v1614_v47 = vld [vmem:[#allocation16 + $0x20] sm:$0xff]  ;;  %v1743_v39 = vld [vmem:[#allocation16 + $0x148] sm:$0xff] }
 0x5b7   :  { %1555 = vmatpush.msrb.mxu2 %v1389_v14  ;;  %1575 = vmatpush.msrb.mxu3 %v1405_v41  ;;  %v1810_v14 = vld [vmem:[#allocation16 + $0x1e8] sm:$0xff]  ;;  %v1742_v41 = vld [vmem:[#allocation16 + $0x140] sm:$0xff] }
 0x5b9   :  { %1556 = vmatpush.msrb.mxu2 %v1388_v48  ;;  %1576 = vmatpush.msrb.mxu3 %v1404_v49  ;;  %v1809_v48 = vld [vmem:[#allocation16 + $0x1e0] sm:$0xff]  ;;  %v1772_v49 = vld [vmem:[#allocation15 + $0x18] sm:$0xff] }
 0x5bb   :  { %1557 = vmatpush.msrb.mxu2 %v1387_v50  ;;  %1577 = vmatpush.msrb.mxu3 %v1403_v51  ;;  %v1808_v50 = vld [vmem:[#allocation16 + $0x1d8] sm:$0xff]  ;;  %v1807_v51 = vld [vmem:[#allocation16 + $0x1d0] sm:$0xff] }
 0x5bd   :  { %1558 = vmatpush.msrb.mxu2 %v1386_v53  ;;  %1578 = vmatpush.msrb.mxu3 %v1402_v54  ;;  %v1806_v53 = vld [vmem:[#allocation16 + $0x1c8] sm:$0xff]  ;;  %v1655_v54 = vld [vmem:[#allocation16 + $0x98] sm:$0xff] }
 0x601   :  { %v1290_v55 = vpop.f32.mrf.mxu2  ;;  %v1310_v56 = vpop.f32.mrf.mxu3 }
 0x602   :  { %1361 = vmatmul.f32.vlgmr.msra.gmra.mxu0 %v1290_v55  ;;  %1381 = vmatmul.f32.vlgmr.msrb.gmra.mxu1 %v1310_v56 }
 0x603   :  { %1434 = vmatmul.f32.vlgmr.msra.gmra.mxu2 %v1290_v55  ;;  %1454 = vmatmul.f32.vlgmr.msra.gmra.mxu3 %v1310_v56  ;;  %v1613_v55 = vld [vmem:[#allocation16 + $0x18] sm:$0xff] }
 0x604   :  { %1503 = vmatpush.msra.mxu0 %v2717_v61  ;;  %1523 = vmatpush.msrb.mxu1 %v2719_v63  ;;  %v1741_v56 = vld [vmem:[#allocation16 + $0x138] sm:$0xff] }
 0x606   :  { %1504 = vmatpush.msra.mxu0 %v2721_v1  ;;  %1524 = vmatpush.msrb.mxu1 %v2725_v2 }
 0x608   :  { %1505 = vmatpush.msra.mxu0 %v2727_v3  ;;  %1525 = vmatpush.msrb.mxu1 %v2729_v8 }
 0x60a   :  { %1956 = vmatmul.msk.f32.vlgmr.msrb.gmra.mxu0 %vm319_vm1, %v1955_v58  ;;  %1957 = vmatmul.msk.f32.vlgmr.msra.gmra.mxu1 %vm319_vm1, %v1955_v58  ;;  %v1654_v58 = vld [vmem:[#allocation16 + $0x90] sm:$0xff] }
 0x60b   :  { %1506 = vmatpush.msra.mxu0 %v2733_v9  ;;  %1526 = vmatpush.msrb.mxu1 %v2735_v11  ;;  %v1667_v11 = vld [vmem:[#allocation16 + $0xf8] sm:$0xff] }
 0x60c   :  { %1668 = vmatpush.msra.mxu2 %v1667_v11  ;;  %v1610_v11 = vld [vmem:[#allocation16] sm:$0xff] }
 0x60d   :  { %1507 = vmatpush.msra.mxu0 %v2739_v13  ;;  %1527 = vmatpush.msrb.mxu1 %v2741_v15  ;;  %v1625_v13 = vld [vmem:[#allocation16 + $0x78] sm:$0xff]  ;;  %v1666_v15 = vld [vmem:[#allocation16 + $0xf0] sm:$0xff] }
 0x60e   :  { %1688 = vmatpush.msra.mxu3 %v1625_v13  ;;  %1669 = vmatpush.msra.mxu2 %v1666_v15  ;;  %v1804_v13 = vld [vmem:[#allocation16 + $0x1b8] sm:$0xff]  ;;  %v1738_v15 = vld [vmem:[#allocation16 + $0x120] sm:$0xff] }
 0x60f   :  { %1508 = vmatpush.msra.mxu0 %v2747_v18  ;;  %1528 = vmatpush.msrb.mxu1 %v2749_v19  ;;  %v1624_v18 = vld [vmem:[#allocation16 + $0x70] sm:$0xff]  ;;  %v1665_v19 = vld [vmem:[#allocation16 + $0xe8] sm:$0xff] }
 0x610   :  { %1689 = vmatpush.msra.mxu3 %v1624_v18  ;;  %1670 = vmatpush.msra.mxu2 %v1665_v19  ;;  %v1803_v18 = vld [vmem:[#allocation16 + $0x1b0] sm:$0xff]  ;;  %v1737_v19 = vld [vmem:[#allocation16 + $0x118] sm:$0xff] }
 0x611   :  { %1509 = vmatpush.msra.mxu0 %v2753_v22  ;;  %1529 = vmatpush.msrb.mxu1 %v2755_v25  ;;  %v1623_v22 = vld [vmem:[#allocation16 + $0x68] sm:$0xff]  ;;  %v1664_v25 = vld [vmem:[#allocation16 + $0xe0] sm:$0xff] }
 0x612   :  { %1690 = vmatpush.msra.mxu3 %v1623_v22  ;;  %1671 = vmatpush.msra.mxu2 %v1664_v25  ;;  %v1802_v22 = vld [vmem:[#allocation16 + $0x1a8] sm:$0xff]  ;;  %v1736_v25 = vld [vmem:[#allocation16 + $0x110] sm:$0xff] }
 0x613   :  { %1510 = vmatpush.msra.mxu0 %v2759_v30  ;;  %1530 = vmatpush.msrb.mxu1 %v2761_v31  ;;  %v1622_v30 = vld [vmem:[#allocation16 + $0x60] sm:$0xff] }
 0x614   :  { %1691 = vmatpush.msra.mxu3 %v1622_v30  ;;  %v1735_v30 = vld [vmem:[#allocation16 + $0x108] sm:$0xff] }
 0x615   :  { %1511 = vmatpush.msra.mxu0 %v2765_v38  ;;  %1531 = vmatpush.msrb.mxu1 %v2767_v40 }
 0x617   :  { %1512 = vmatpush.msra.mxu0 %v2777_v0  ;;  %1532 = vmatpush.msrb.mxu1 %v2779_v6  ;;  %v1663_v0 = vld [vmem:[#allocation16 + $0xd8] sm:$0xff] }
 0x618   :  { %v1621_v6 = vld [vmem:[#allocation16 + $0x58] sm:$0xff]  ;;  %1672 = vmatpush.msra.mxu2 %v1663_v0  ;;  %v1799_v0 = vld [vmem:[#allocation16 + $0x190] sm:$0xff] }
 0x619   :  { %1513 = vmatpush.msra.mxu0 %v2783_v10  ;;  %1533 = vmatpush.msrb.mxu1 %v2785_v12 }
 0x61a   :  { %1692 = vmatpush.msra.mxu3 %v1621_v6  ;;  %v1798_v6 = vld [vmem:[#allocation16 + $0x188] sm:$0xff] }
 0x61b   :  { %1514 = vmatpush.msra.mxu0 %v2789_v17  ;;  %1534 = vmatpush.msrb.mxu1 %v2791_v24 }
 0x61d   :  { %1515 = vmatpush.msra.mxu0 %v2793_v29  ;;  %1535 = vmatpush.msrb.mxu1 %v2795_v36  ;;  %v1662_v29 = vld [vmem:[#allocation16 + $0xd0] sm:$0xff] }
 0x61e   :  { %v1620_v36 = vld [vmem:[#allocation16 + $0x50] sm:$0xff]  ;;  %1673 = vmatpush.msra.mxu2 %v1662_v29  ;;  %v1852_v29 = vld [vmem:[%s2952_s13 + $0x60] sm:$0xff] }
 0x61f   :  { %1516 = vmatpush.msra.mxu0 %v2801_v37  ;;  %1536 = vmatpush.msrb.mxu1 %v2803_v7 }
 0x620   :  { %1693 = vmatpush.msra.mxu3 %v1620_v36  ;;  %v1851_v36 = vld [vmem:[%s2952_s13 + $0x58] sm:$0xff] }
 0x621   :  { %1517 = vmatpush.msra.mxu0 %v2807_v46  ;;  %1537 = vmatpush.msrb.mxu1 %v2809_v52  ;;  %v1661_v46 = vld [vmem:[#allocation16 + $0xc8] sm:$0xff] }
 0x622   :  { %v1619_v52 = vld [vmem:[#allocation16 + $0x48] sm:$0xff]  ;;  %1674 = vmatpush.msra.mxu2 %v1661_v46  ;;  %v1848_v46 = vld [vmem:[%s2952_s13 + $0x40] sm:$0xff] }
 0x623   :  { %1518 = vmatpush.msra.mxu0 %v2813_v42  ;;  %1538 = vmatpush.msrb.mxu1 %v2815_v57  ;;  %v1627_v57 = vld [vmem:[#allocation15 + $0x8] sm:$0xff] }
 0x624   :  { %1694 = vmatpush.msra.mxu3 %v1619_v52  ;;  %1675 = vmatpush.msra.mxu2 %v1660_v16 }
 0x626   :  { %1695 = vmatpush.msra.mxu3 %v1618_v45  ;;  %1676 = vmatpush.msra.mxu2 %v1659_v62  ;;  %v1844_v45 = vld [vmem:[%s2952_s13 + $0x20] sm:$0xff]  ;;  %v1843_v62 = vld [vmem:[%s2952_s13 + $0x18] sm:$0xff] }
 0x628   :  { %1696 = vmatpush.msra.mxu3 %v1617_v5  ;;  %1677 = vmatpush.msra.mxu2 %v1658_v20  ;;  %v1841_v5 = vld [vmem:[%s2952_s13 + $0x8] sm:$0xff]  ;;  %v1840_v20 = vld [vmem:[%s2952_s13] sm:$0xff] }
 0x62a   :  { %1697 = vmatpush.msra.mxu3 %v1616_v26  ;;  %1678 = vmatpush.msra.mxu2 %v1657_v43 }
 0x62c   :  { %1698 = vmatpush.msra.mxu3 %v1615_v33  ;;  %1679 = vmatpush.msra.mxu2 %v1656_v21 }
 0x62e   :  { %1699 = vmatpush.msra.mxu3 %v1614_v47  ;;  %1680 = vmatpush.msra.mxu2 %v1655_v54  ;;  %v1981_v47 = vld [vmem:[%s2953_s14] ss:$0 sm:$0xff] }
 0x630   :  { %1700 = vmatpush.msra.mxu3 %v1613_v55  ;;  %1681 = vmatpush.msra.mxu2 %v1654_v58 }
 0x67f   :  { %v1362_v61 = vpop.f32.mrf.mxu0  ;;  %v1382_v63 = vpop.f32.mrf.mxu1 }
 0x680   :  { %v1383_v1 = vadd.f32 %v1382_v63, %v1362_v61  ;;  %v1612_v61 = vld [vmem:[#allocation16 + $0x10] sm:$0xff] }
 0x681   :  { %v1740_v63 = vld [vmem:[#allocation16 + $0x130] sm:$0xff]  ;;  %1701 = vmatpush.msra.mxu3 %v1612_v61 }
 0x686   :  { %v1435_v8 = vpop.f32.mrf.mxu2  ;;  %v1455_v9 = vpop.f32.mrf.mxu3 }
 0x687   :  { %v1480_v2 = vpop.f32.mrf.mxu0  ;;  %v1500_v3 = vpop.f32.mrf.mxu1  ;;  %v1456_v40 = vadd.f32 %v1455_v9, %v1435_v8  ;;  %v1805_v8 = vld [vmem:[#allocation16 + $0x1c0] sm:$0xff] }
 0x688   :  { %1559 = vmatmul.f32.vlgmr.msrb.gmra.mxu2 %v1480_v2  ;;  %1579 = vmatmul.f32.vlgmr.msrb.gmra.mxu3 %v1500_v3  ;;  %v1652_v9 = vld [vmem:[#allocation16 + $0x80] sm:$0xff] }
 0x689   :  { %1519 = vmatmul.f32.vlgmr.msra.gmra.mxu0 %v1480_v2  ;;  %1539 = vmatmul.f32.vlgmr.msrb.gmra.mxu1 %v1500_v3  ;;  %v1583_v37 = vmax.f32 %v1383_v1, %v1456_v40  ;;  %v1653_v1 = vld [vmem:[#allocation16 + $0x88] sm:$0xff]  ;;  %v1800_v40 = vld [vmem:[#allocation16 + $0x198] sm:$0xff] }
 0x68a   :  { %v1611_v2 = vld [vmem:[#allocation16 + $0x8] sm:$0xff]  ;;  %1682 = vmatpush.msra.mxu2 %v1653_v1 }
 0x68b   :  { %v1739_v3 = vld [vmem:[#allocation16 + $0x128] sm:$0xff]  ;;  %1702 = vmatpush.msra.mxu3 %v1611_v2 }
 0x68c   :  { %1683 = vmatpush.msra.mxu2 %v1652_v9 }
 0x68d   :  { %1703 = vmatpush.msra.mxu3 %v1610_v11 }
 0x706   :  { %v1520_v31 = vpop.f32.mrf.mxu0  ;;  %v1540_v38 = vpop.f32.mrf.mxu1 }
 0x707   :  { %v1541_v17 = vadd.f32 %v1540_v38, %v1520_v31  ;;  %v1801_v31 = vld [vmem:[#allocation16 + $0x1a0] sm:$0xff] }
 0x708   :  { %v1734_v38 = vld [vmem:[#allocation16 + $0x100] sm:$0xff] }
 0x70b   :  { %v1560_v10 = vpop.f32.mrf.mxu2  ;;  %v1580_v12 = vpop.f32.mrf.mxu3 }
 0x70c   :  { %v1581_v24 = vadd.f32 %v1580_v12, %v1560_v10  ;;  %v1797_v10 = vld [vmem:[#allocation16 + $0x180] sm:$0xff]  ;;  %v1855_v12 = vld [vmem:[%s2952_s13 + $0x78] sm:$0xff] }
 0x70d   :  { %1860 = vmatpush.msrb.mxu2 %v1855_v12 }
 0x70e   :  { %v1584_v7 = vmax.f32 %v1541_v17, %v1581_v24  ;;  %v1854_v17 = vld [vmem:[%s2952_s13 + $0x70] sm:$0xff]  ;;  %v1853_v24 = vld [vmem:[%s2952_s13 + $0x68] sm:$0xff] }
 0x70f   :  { %1861 = vmatpush.msrb.mxu2 %v1854_v17 }
 0x710   :  { %v1585_v42 = vmax.f32 %v1583_v37, %v1584_v7  ;;  %v1850_v37 = vld [vmem:[%s2952_s13 + $0x50] sm:$0xff]  ;;  %v1849_v7 = vld [vmem:[%s2952_s13 + $0x48] sm:$0xff] }
 0x711   :  { %1862 = vmatpush.msrb.mxu2 %v1853_v24 }
 0x712   :  { %1605 = vmatpush.msrb.mxu0 %v1585_v42  ;;  %1646 = vmatpush.msra.mxu1 %v1585_v42 }
 0x713   :  { %1959 = vmatmul.msk.f32.vlgmr.msra.gmra.mxu1 %vm1069_vm3, %v1627_v57  ;;  %1958 = vmatmul.msk.f32.vlgmr.msrb.gmra.mxu0 %vm1069_vm3, %v1586_v59  ;;  %v1847_v57 = vld [vmem:[%s2952_s13 + $0x38] sm:$0xff]  ;;  %v1846_v59 = vld [vmem:[%s2952_s13 + $0x30] sm:$0xff] }
 0x714   :  { %1728 = vmatpush.msra.mxu0 %v1585_v42  ;;  %1750 = vmatpush.msrb.mxu1 %v1749_v60 }
 0x715   :  { %1863 = vmatpush.msrb.mxu2 %v1852_v29 }
 0x716   :  { %1791 = vmatpush.msrb.mxu0 %v1585_v42  ;;  %1751 = vmatpush.msrb.mxu1 %v1748_v44  ;;  %v1845_v44 = vld [vmem:[%s2952_s13 + $0x28] sm:$0xff] }
 0x717   :  { %1864 = vmatpush.msrb.mxu2 %v1851_v36 }
 0x718   :  { %1752 = vmatpush.msrb.mxu1 %v1747_v4  ;;  %v1842_v4 = vld [vmem:[%s2952_s13 + $0x10] sm:$0xff] }
 0x719   :  { %1865 = vmatpush.msrb.mxu2 %v1850_v37 }
 0x71a   :  { %1753 = vmatpush.msrb.mxu1 %v1746_v23 }
 0x71b   :  { %1960 = vmatmul.msk.f32.vlgmr.msra.gmra.mxu0 %vm1069_vm3, %v1709_v27  ;;  %1866 = vmatpush.msrb.mxu2 %v1849_v7 }
 0x71c   :  { %1754 = vmatpush.msrb.mxu1 %v1745_v28  ;;  %1813 = vmatpush.msra.mxu0 %v1812_v32  ;;  %v1980_v32 = vld [vmem:[%s2951_s12] ss:$0 sm:$0xff] }
 0x71d   :  { %1867 = vmatpush.msrb.mxu2 %v1848_v46 }
 0x71e   :  { %1755 = vmatpush.msrb.mxu1 %v1744_v34  ;;  %1814 = vmatpush.msra.mxu0 %v1811_v35 }
 0x71f   :  { %1868 = vmatpush.msrb.mxu2 %v1847_v57 }
 0x720   :  { %1756 = vmatpush.msrb.mxu1 %v1743_v39  ;;  %1815 = vmatpush.msra.mxu0 %v1810_v14 }
 0x721   :  { %1869 = vmatpush.msrb.mxu2 %v1846_v59 }
 0x722   :  { %1757 = vmatpush.msrb.mxu1 %v1742_v41  ;;  %1816 = vmatpush.msra.mxu0 %v1809_v48 }
 0x723   :  { %1961 = vmatmul.msk.f32.vlgmr.msrb.gmra.mxu0 %vm1069_vm3, %v1772_v49  ;;  %1870 = vmatpush.msrb.mxu2 %v1845_v44 }
 0x724   :  { %1817 = vmatpush.msra.mxu0 %v1808_v50  ;;  %1758 = vmatpush.msrb.mxu1 %v1741_v56 }
 0x725   :  { %1871 = vmatpush.msrb.mxu2 %v1844_v45 }
 0x726   :  { %1818 = vmatpush.msra.mxu0 %v1807_v51  ;;  %1759 = vmatpush.msrb.mxu1 %v1740_v63 }
 0x727   :  { %1872 = vmatpush.msrb.mxu2 %v1843_v62 }
 0x728   :  { %1819 = vmatpush.msra.mxu0 %v1806_v53  ;;  %1760 = vmatpush.msrb.mxu1 %v1739_v3 }
 0x729   :  { %1873 = vmatpush.msrb.mxu2 %v1842_v4 }
 0x72a   :  { %1820 = vmatpush.msra.mxu0 %v1805_v8  ;;  %1761 = vmatpush.msrb.mxu1 %v1738_v15 }
 0x72b   :  { %1874 = vmatpush.msrb.mxu2 %v1841_v5 }
 0x72c   :  { %1821 = vmatpush.msra.mxu0 %v1804_v13  ;;  %1762 = vmatpush.msrb.mxu1 %v1737_v19 }
 0x72d   :  { %1875 = vmatpush.msrb.mxu2 %v1840_v20 }
 0x72e   :  { %1822 = vmatpush.msra.mxu0 %v1803_v18  ;;  %1763 = vmatpush.msrb.mxu1 %v1736_v25 }
 0x730   :  { %1823 = vmatpush.msra.mxu0 %v1802_v22  ;;  %1764 = vmatpush.msrb.mxu1 %v1735_v30 }
 0x732   :  { %1824 = vmatpush.msra.mxu0 %v1801_v31  ;;  %1765 = vmatpush.msrb.mxu1 %v1734_v38 }
 0x734   :  { %1825 = vmatpush.msra.mxu0 %v1800_v40 }
 0x736   :  { %1826 = vmatpush.msra.mxu0 %v1799_v0 }
 0x738   :  { %1827 = vmatpush.msra.mxu0 %v1798_v6 }
 0x73a   :  { %1828 = vmatpush.msra.mxu0 %v1797_v10 }
 0x790   :  { %v1648_v52 = vpop.f32.mrf.mxu1  ;;  %v1607_v42 = vpop.f32.mrf.mxu0 }
 0x791   :  { %1684 = vmatmul.f32.vlgmr.msra.gmra.mxu2 %v1648_v52  ;;  %1704 = vmatmul.f32.vlgmr.msra.gmra.mxu3 %v1607_v42 }
 0x798   :  { %v1730_v60 = vpop.f32.mrf.mxu0 }
 0x799   :  { %1766 = vmatmul.f32.vlgmr.msrb.gmra.mxu1 %v1730_v60 }
 0x7a0   :  { %v1793_v16 = vpop.f32.mrf.mxu0 }
 0x7a1   :  { %1829 = vmatmul.f32.vlgmr.msra.gmra.mxu0 %v1793_v16 }
 0x814   :  { %v1685_v23 = vpop.f32.mrf.mxu2  ;;  %v1705_v26 = vpop.f32.mrf.mxu3 }
 0x815   :  { %v1706_v43 = vadd.f32 %v1705_v26, %v1685_v23 }
 0x816   :  { %v1767_v27 = vpop.f32.mrf.mxu1 }
 0x817   :  { %v1770_v28 = vadd.f32 %v1767_v27, %v1706_v43 }
 0x81e   :  { %v1830_v33 = vpop.f32.mrf.mxu0 }
 0x81f   :  { %v1833_v34 = vadd.f32 %v1830_v33, %v1770_v28 }
 0x821   :  { %v1838_v21 = vadd.f32 %v1980_v32, %v1833_v34 }
 0x823   :  { %v1839_v35 = vmax.f32 %v1838_v21, 0.0 }
 0x825   :  { %1876 = vmatmul.f32.vlgmr.msrb.gmra.mxu2 %v1839_v35 }
 0x8a8   :  { %v1877_v39 = vpop.f32.mrf.mxu2 }
 0x8a9   :  { %v1878_v14 = vadd.f32 %v1981_v47, %v1877_v39 }
 0x8ab   :  { %1880 = vst [vmem:[%s2954_s15] sm:$0xff] %v1878_v14 }
 0x8ac   :  { %1885 = vsyncpa [#allocation3], 1 }
 0x8ad   :  { %1886 = vsyncpa [#allocation5], 1 }
 0x8ae   :  { %1887 = vsyncpa [#allocation8], 1 }
 0x8af   :  { %1888 = vsyncpa [#allocation11], 1 }
 0x8b0   :  { %1889 = vsyncpa [#allocation14], 1 }
 0x8b1   :  { %1890 = vsyncpa [#allocation17], 1 }

</bundles_post_ra>
